<compile_context>
chip_gen: v5e
topology: v5e:2x2
jax: 0.10.0
libtpu: 0.0.40
codegen_flags: <defaults>
</compile_context>

<pallas_src>
import functools

import jax
import jax.numpy as jnp
from jax import lax
from jax.experimental import pallas as pl
from jax.experimental.pallas import tpu as pltpu

_EPS = 1e-5
_LANES = 128                      # lane-dense channel padding
_VMEM_LIMIT = 32 * 1024 * 1024    # explicit budget: safe on v5e/v6e/v7x


# ----------------------- phase 1: conv + BN partials ----------------------- #

def _conv3x3_stats_kernel(x_ref, w_ref, conv_ref, sum_ref, sq_ref, xpad_ref,
                          *, stride):
    """One image: conv3x3 (pad=1, stride) as a single fused im2col bf16
    matmul, plus per-channel sum / sum-of-squares partials for BatchNorm."""
    _, H, W, C = x_ref.shape            # C == _LANES
    _, Ho, Wo, Cp = conv_ref.shape      # Cp == _LANES

    # In-kernel zero halo (replaces the wrapper-side jnp.pad HBM round-trip).
    xpad_ref[...] = jnp.zeros_like(xpad_ref)
    xpad_ref[:, 1:H + 1, 1:W + 1, :] = x_ref[...]

    # im2col: 9 shifted (strided) taps concatenated on the lane-aligned
    # channel axis -> one MXU contraction instead of 9 small matmuls.
    taps = []
    for di in range(3):
        for dj in range(3):
            if stride == 1:
                p = xpad_ref[:, pl.ds(di, Ho), pl.ds(dj, Wo), :]
            else:
                p = xpad_ref[:, pl.ds(di, Ho, stride), pl.ds(dj, Wo, stride), :]
            taps.append(p.reshape(Ho * Wo, C).astype(jnp.bfloat16))
    patches = jnp.concatenate(taps, axis=-1)                  # (Ho*Wo, 9*C) bf16

    acc = jnp.dot(patches, w_ref[...],                        # single MXU pass
                  preferred_element_type=jnp.float32)         # (Ho*Wo, Cp) f32

    conv_ref[...] = acc.reshape(1, Ho, Wo, Cp)

    # One-pass BN partials (sum, sum of squares) per channel for this image.
    s = jnp.sum(acc, axis=0, keepdims=True)                   # (1, Cp)
    ss = jnp.sum(acc * acc, axis=0, keepdims=True)            # (1, Cp)
    sum_ref[...] = jnp.broadcast_to(s.reshape(1, 1, Cp), sum_ref.shape)
    sq_ref[...] = jnp.broadcast_to(ss.reshape(1, 1, Cp), sq_ref.shape)


# ----------------- phase 2: BN finalize (+ residual) (+ ReLU) -------------- #

def _bn_finalize_kernel(*refs, inv_n, relu, has_res):
    if has_res:
        conv_ref, sum_ref, sq_ref, g_ref, b_ref, res_ref, o_ref = refs
    else:
        conv_ref, sum_ref, sq_ref, g_ref, b_ref, o_ref = refs
        res_ref = None
    Cp = o_ref.shape[-1]

    # Global batch statistics from the per-image partials (all rows of the
    # partials hold the same value; row 0 of the N-sum is the total).
    s = jnp.sum(sum_ref[...], axis=0)[0:1, :]                 # (1, Cp)
    ss = jnp.sum(sq_ref[...], axis=0)[0:1, :]                 # (1, Cp)
    mean = s * inv_n
    var = jnp.maximum(ss * inv_n - mean * mean, 0.0)
    scale = lax.rsqrt(var + _EPS) * g_ref[...]
    shift = b_ref[...] - mean * scale

    y = conv_ref[...] * scale.reshape(1, 1, 1, Cp) + shift.reshape(1, 1, 1, Cp)
    if res_ref is not None:
        y = y + res_ref[...]
    if relu:
        y = jnp.maximum(y, 0.0)
    o_ref[...] = y.astype(o_ref.dtype)


# ------------------------------ stage wrapper ------------------------------ #

def conv3x3_bn(x, w, gamma, beta, *, stride, relu, residual=None):
    """conv3x3(pad=1, stride) -> batch-stat BN -> (+residual) -> (ReLU).

    x, residual : (N, H, W, 128) lane-padded NHWC (true channels first, rest 0)
    w           : (3, 3, cin, cout) HWIO, unpadded
    Returns (N, Ho, Wo, 128) f32; channels >= cout are exactly zero.
    """
    N, H, W, C = x.shape
    assert C == _LANES
    _, _, cin, cout = w.shape
    Ho = (H - 1) // stride + 1
    Wo = (W - 1) // stride + 1
    Cp = _LANES

    # Parameter plumbing (tiny, trace-time): zero-pad to lane width, im2col
    # weight layout, bf16 operands for MXU peak throughput.
    w_p = jnp.pad(w.astype(jnp.float32),
                  ((0, 0), (0, 0), (0, Cp - cin), (0, Cp - cout)))
    w_flat = w_p.reshape(9 * Cp, Cp).astype(jnp.bfloat16)
    g2 = jnp.pad(gamma.astype(jnp.float32), (0, Cp - cout)).reshape(1, Cp)
    b2 = jnp.pad(beta.astype(jnp.float32), (0, Cp - cout)).reshape(1, Cp)

    cparams = pltpu.CompilerParams(
        dimension_semantics=("parallel",),      # shard images across TCs (v7x)
        vmem_limit_bytes=_VMEM_LIMIT,
    )

    # Phase 1: per-image conv + BN partials (pipelined over the batch axis).
    conv_out, psum, psq = pl.pallas_call(
        functools.partial(_conv3x3_stats_kernel, stride=stride),
        grid=(N,),
        in_specs=[
            pl.BlockSpec((1, H, W, Cp), lambda i: (i, 0, 0, 0)),
            pl.BlockSpec((9 * Cp, Cp), lambda i: (0, 0)),
        ],
        out_specs=(
            pl.BlockSpec((1, Ho, Wo, Cp), lambda i: (i, 0, 0, 0)),
            pl.BlockSpec((1, 8, Cp), lambda i: (i, 0, 0)),
            pl.BlockSpec((1, 8, Cp), lambda i: (i, 0, 0)),
        ),
        out_shape=(
            jax.ShapeDtypeStruct((N, Ho, Wo, Cp), jnp.float32),
            jax.ShapeDtypeStruct((N, 8, Cp), jnp.float32),
            jax.ShapeDtypeStruct((N, 8, Cp), jnp.float32),
        ),
        scratch_shapes=[pltpu.VMEM((1, H + 2, W + 2, Cp), jnp.float32)],
        compiler_params=cparams,
    )(x.astype(jnp.float32), w_flat)

    # Phase 2: global-stat normalize + residual + ReLU.
    inv_n = 1.0 / float(N * Ho * Wo)
    args = [conv_out, psum, psq, g2, b2]
    in_specs = [
        pl.BlockSpec((1, Ho, Wo, Cp), lambda i: (i, 0, 0, 0)),
        pl.BlockSpec((N, 8, Cp), lambda i: (0, 0, 0)),
        pl.BlockSpec((N, 8, Cp), lambda i: (0, 0, 0)),
        pl.BlockSpec((1, Cp), lambda i: (0, 0)),
        pl.BlockSpec((1, Cp), lambda i: (0, 0)),
    ]
    if residual is not None:
        args.append(residual.astype(jnp.float32))
        in_specs.append(pl.BlockSpec((1, Ho, Wo, Cp), lambda i: (i, 0, 0, 0)))

    return pl.pallas_call(
        functools.partial(_bn_finalize_kernel, inv_n=inv_n, relu=relu,
                          has_res=residual is not None),
        grid=(N,),
        in_specs=in_specs,
        out_specs=pl.BlockSpec((1, Ho, Wo, Cp), lambda i: (i, 0, 0, 0)),
        out_shape=jax.ShapeDtypeStruct((N, Ho, Wo, Cp), jnp.float32),
        compiler_params=cparams,
    )(*args)


# ----------------------------- BasicBlock API ------------------------------ #

def init_basic_block_params(key, in_planes, planes):
    k1, k2, k3, k4, k5, k6 = jax.random.split(key, 6)
    return {
        "w1": 0.1 * jax.random.normal(k1, (3, 3, in_planes, planes), jnp.float32),
        "g1": 1.0 + 0.1 * jax.random.normal(k2, (planes,), jnp.float32),
        "b1": 0.1 * jax.random.normal(k3, (planes,), jnp.float32),
        "w2": 0.1 * jax.random.normal(k4, (3, 3, planes, planes), jnp.float32),
        "g2": 1.0 + 0.1 * jax.random.normal(k5, (planes,), jnp.float32),
        "b2": 0.1 * jax.random.normal(k6, (planes,), jnp.float32),
    }


def basic_block_forward_nhwc(xp, params, *, in_planes, planes, stride):
    """xp: (N,H,W,128) lane-padded NHWC (true channels = in_planes, rest 0).
    Returns (N,Ho,Wo,128) lane-padded (true channels = planes, rest 0)."""
    out = conv3x3_bn(xp, params["w1"], params["g1"], params["b1"],
                     stride=stride, relu=True)

    if stride != 1 or in_planes != planes:
        # "Option A" shortcut: stride-2 subsample, channels shifted by
        # planes//4 with zero padding (small wrapper glue on the downsampled
        # tensor, matching the PyTorch LambdaLayer).
        pad = planes // 4
        sc = jnp.pad(xp[:, ::2, ::2, :in_planes],
                     ((0, 0), (0, 0), (0, 0), (pad, _LANES - in_planes - pad)))
    else:
        sc = xp

    return conv3x3_bn(out, params["w2"], params["g2"], params["b2"],
                      stride=1, relu=True, residual=sc)


def basic_block_forward(x_nchw, params, *, in_planes, planes, stride):
    # PyTorch-parity boundary.  In a full network, do the NCHW<->NHWC
    # transpose and the one-time lane padding at the stem/head, not per block.
    N, C, H, W = x_nchw.shape
    x = jnp.transpose(x_nchw, (0, 2, 3, 1)).astype(jnp.float32)
    xp = jnp.pad(x, ((0, 0), (0, 0), (0, 0), (0, _LANES - C)))
    out = basic_block_forward_nhwc(xp, params, in_planes=in_planes,
                                   planes=planes, stride=stride)
    return jnp.transpose(out[..., :planes], (0, 3, 1, 2))


# ------------------------------ pure-JAX ref ------------------------------- #

def _ref_forward(x_nchw, params, *, in_planes, planes, stride):
    x = jnp.transpose(x_nchw, (0, 2, 3, 1)).astype(jnp.float32)

    def conv(h, w, s):
        return lax.conv_general_dilated(
            h, w, (s, s), ((1, 1), (1, 1)),
            dimension_numbers=("NHWC", "HWIO", "NHWC"))

    def bn(y, g, b):
        mean = jnp.mean(y, axis=(0, 1, 2), keepdims=True)
        var = jnp.mean((y - mean) ** 2, axis=(0, 1, 2), keepdims=True)
        return (y - mean) * lax.rsqrt(var + _EPS) * g + b

    out = jax.nn.relu(bn(conv(x, params["w1"], stride), params["g1"], params["b1"]))
    out = bn(conv(out, params["w2"], 1), params["g2"], params["b2"])
    if stride != 1 or in_planes != planes:
        pad = planes // 4
        sc = jnp.pad(x[:, ::2, ::2, :], ((0, 0), (0, 0), (0, 0), (pad, pad)))
    else:
        sc = x
    return jnp.transpose(jax.nn.relu(out + sc), (0, 3, 1, 2))


# ----------------------------------- main ---------------------------------- #

if __name__ == "__main__":
    key = jax.random.PRNGKey(0)
    kx, kp1, kp2 = jax.random.split(key, 3)

    # Case 1: downsampling block (stride=2, channel-expanding "option A" shortcut).
    in_planes, planes, stride = 4, 8, 2
    x = jax.random.normal(kx, (2, in_planes, 16, 16), jnp.float32)  # NCHW
    params = init_basic_block_params(kp1, in_planes, planes)
    y = basic_block_forward(x, params, in_planes=in_planes, planes=planes, stride=stride)
    y = jax.block_until_ready(y)
    y_ref = _ref_forward(x, params, in_planes=in_planes, planes=planes, stride=stride)
    assert y.shape == (2, planes, 8, 8)
    assert jnp.allclose(y, y_ref, rtol=3e-2, atol=3e-2)

    # Case 2: identity-shortcut block (stride=1, in_planes == planes).
    params2 = init_basic_block_params(kp2, 4, 4)
    y2 = basic_block_forward(x, params2, in_planes=4, planes=4, stride=1)
    y2 = jax.block_until_ready(y2)
    y2_ref = _ref_forward(x, params2, in_planes=4, planes=4, stride=1)
    assert y2.shape == (2, 4, 16, 16)
    assert jnp.allclose(y2, y2_ref, rtol=3e-2, atol=3e-2)

    print("KERNEL_OK")
</pallas_src>

<mosaic_0001>
module attributes {stable_mosaic.version = 11 : i64} {
  func.func @_conv3x3_stats_kernel(%arg0: i32, %arg1: memref<1x16x16x128xf32, #tpu.memory_space<vmem>>, %arg2: memref<1152x128xbf16, #tpu.memory_space<vmem>>, %arg3: memref<1x8x8x128xf32, #tpu.memory_space<vmem>>, %arg4: memref<1x8x128xf32, #tpu.memory_space<vmem>>, %arg5: memref<1x8x128xf32, #tpu.memory_space<vmem>>, %arg6: memref<1x18x18x128xf32, #tpu.memory_space<vmem>>) attributes {dimension_semantics = [#tpu.dimension_semantics<parallel>], iteration_bounds = array<i64: 2>, scalar_prefetch = 0 : i64, scratch_operands = 1 : i64, tpu.core_type = #tpu.core_type<tc>, window_params = [{transform_indices = @transform_0, window_bounds = array<i64: 1, 16, 16, 128>}, {pipeline_mode = #tpu.pipeline_mode<synchronous>, transform_indices = @transform_1, window_bounds = array<i64: 1152, 128>}, {transform_indices = @transform_2, window_bounds = array<i64: 1, 8, 8, 128>}, {transform_indices = @transform_3, window_bounds = array<i64: 1, 8, 128>}, {transform_indices = @transform_4, window_bounds = array<i64: 1, 8, 128>}]} {
    %cst = arith.constant 0.000000e+00 : f32
    %0 = vector.broadcast %cst : f32 to vector<1x18x18x128xf32>
    %c0 = arith.constant 0 : index
    %c0_0 = arith.constant 0 : index
    %c0_1 = arith.constant 0 : index
    %c0_2 = arith.constant 0 : index
    %1 = vector.load %arg6[%c0, %c0_0, %c0_1, %c0_2] : memref<1x18x18x128xf32, #tpu.memory_space<vmem>>, vector<1x18x18x128xf32>
    tpu.vector_store %arg6[%c0, %c0_0, %c0_1, %c0_2], %0 {strides = array<i32>} : memref<1x18x18x128xf32, #tpu.memory_space<vmem>>, vector<1x18x18x128xf32>,
    %c0_3 = arith.constant 0 : index
    %c0_4 = arith.constant 0 : index
    %c0_5 = arith.constant 0 : index
    %c0_6 = arith.constant 0 : index
    %2 = vector.load %arg1[%c0_3, %c0_4, %c0_5, %c0_6] : memref<1x16x16x128xf32, #tpu.memory_space<vmem>>, vector<1x16x16x128xf32>
    %c0_7 = arith.constant 0 : index
    %c1 = arith.constant 1 : index
    %c1_8 = arith.constant 1 : index
    %c0_9 = arith.constant 0 : index
    %3 = vector.load %arg6[%c0_7, %c1, %c1_8, %c0_9] : memref<1x18x18x128xf32, #tpu.memory_space<vmem>>, vector<1x16x16x128xf32>
    tpu.vector_store %arg6[%c0_7, %c1, %c1_8, %c0_9], %2 {strides = array<i32>} : memref<1x18x18x128xf32, #tpu.memory_space<vmem>>, vector<1x16x16x128xf32>,
    %c0_10 = arith.constant 0 : index
    %c0_11 = arith.constant 0 : index
    %c0_12 = arith.constant 0 : index
    %c0_13 = arith.constant 0 : index
    %4 = tpu.strided_load %arg6[%c0_10, %c0_11, %c0_12, %c0_13] {strides = array<i32: 1, 2, 2, 1>} : memref<1x18x18x128xf32, #tpu.memory_space<vmem>>, vector<1x8x8x128xf32>
    %5 = vector.shape_cast %4 : vector<1x8x8x128xf32> to vector<64x128xf32>
    %6 = arith.truncf %5 : vector<64x128xf32> to vector<64x128xbf16>
    %c0_14 = arith.constant 0 : index
    %c0_15 = arith.constant 0 : index
    %c1_16 = arith.constant 1 : index
    %c0_17 = arith.constant 0 : index
    %7 = tpu.strided_load %arg6[%c0_14, %c0_15, %c1_16, %c0_17] {strides = array<i32: 1, 2, 2, 1>} : memref<1x18x18x128xf32, #tpu.memory_space<vmem>>, vector<1x8x8x128xf32>
    %8 = vector.shape_cast %7 : vector<1x8x8x128xf32> to vector<64x128xf32>
    %9 = arith.truncf %8 : vector<64x128xf32> to vector<64x128xbf16>
    %c0_18 = arith.constant 0 : index
    %c0_19 = arith.constant 0 : index
    %c2 = arith.constant 2 : index
    %c0_20 = arith.constant 0 : index
    %10 = tpu.strided_load %arg6[%c0_18, %c0_19, %c2, %c0_20] {strides = array<i32: 1, 2, 2, 1>} : memref<1x18x18x128xf32, #tpu.memory_space<vmem>>, vector<1x8x8x128xf32>
    %11 = vector.shape_cast %10 : vector<1x8x8x128xf32> to vector<64x128xf32>
    %12 = arith.truncf %11 : vector<64x128xf32> to vector<64x128xbf16>
    %c0_21 = arith.constant 0 : index
    %c1_22 = arith.constant 1 : index
    %c0_23 = arith.constant 0 : index
    %c0_24 = arith.constant 0 : index
    %13 = tpu.strided_load %arg6[%c0_21, %c1_22, %c0_23, %c0_24] {strides = array<i32: 1, 2, 2, 1>} : memref<1x18x18x128xf32, #tpu.memory_space<vmem>>, vector<1x8x8x128xf32>
    %14 = vector.shape_cast %13 : vector<1x8x8x128xf32> to vector<64x128xf32>
    %15 = arith.truncf %14 : vector<64x128xf32> to vector<64x128xbf16>
    %c0_25 = arith.constant 0 : index
    %c1_26 = arith.constant 1 : index
    %c1_27 = arith.constant 1 : index
    %c0_28 = arith.constant 0 : index
    %16 = tpu.strided_load %arg6[%c0_25, %c1_26, %c1_27, %c0_28] {strides = array<i32: 1, 2, 2, 1>} : memref<1x18x18x128xf32, #tpu.memory_space<vmem>>, vector<1x8x8x128xf32>
    %17 = vector.shape_cast %16 : vector<1x8x8x128xf32> to vector<64x128xf32>
    %18 = arith.truncf %17 : vector<64x128xf32> to vector<64x128xbf16>
    %c0_29 = arith.constant 0 : index
    %c1_30 = arith.constant 1 : index
    %c2_31 = arith.constant 2 : index
    %c0_32 = arith.constant 0 : index
    %19 = tpu.strided_load %arg6[%c0_29, %c1_30, %c2_31, %c0_32] {strides = array<i32: 1, 2, 2, 1>} : memref<1x18x18x128xf32, #tpu.memory_space<vmem>>, vector<1x8x8x128xf32>
    %20 = vector.shape_cast %19 : vector<1x8x8x128xf32> to vector<64x128xf32>
    %21 = arith.truncf %20 : vector<64x128xf32> to vector<64x128xbf16>
    %c0_33 = arith.constant 0 : index
    %c2_34 = arith.constant 2 : index
    %c0_35 = arith.constant 0 : index
    %c0_36 = arith.constant 0 : index
    %22 = tpu.strided_load %arg6[%c0_33, %c2_34, %c0_35, %c0_36] {strides = array<i32: 1, 2, 2, 1>} : memref<1x18x18x128xf32, #tpu.memory_space<vmem>>, vector<1x8x8x128xf32>
    %23 = vector.shape_cast %22 : vector<1x8x8x128xf32> to vector<64x128xf32>
    %24 = arith.truncf %23 : vector<64x128xf32> to vector<64x128xbf16>
    %c0_37 = arith.constant 0 : index
    %c2_38 = arith.constant 2 : index
    %c1_39 = arith.constant 1 : index
    %c0_40 = arith.constant 0 : index
    %25 = tpu.strided_load %arg6[%c0_37, %c2_38, %c1_39, %c0_40] {strides = array<i32: 1, 2, 2, 1>} : memref<1x18x18x128xf32, #tpu.memory_space<vmem>>, vector<1x8x8x128xf32>
    %26 = vector.shape_cast %25 : vector<1x8x8x128xf32> to vector<64x128xf32>
    %27 = arith.truncf %26 : vector<64x128xf32> to vector<64x128xbf16>
    %c0_41 = arith.constant 0 : index
    %c2_42 = arith.constant 2 : index
    %c2_43 = arith.constant 2 : index
    %c0_44 = arith.constant 0 : index
    %28 = tpu.strided_load %arg6[%c0_41, %c2_42, %c2_43, %c0_44] {strides = array<i32: 1, 2, 2, 1>} : memref<1x18x18x128xf32, #tpu.memory_space<vmem>>, vector<1x8x8x128xf32>
    %29 = vector.shape_cast %28 : vector<1x8x8x128xf32> to vector<64x128xf32>
    %30 = arith.truncf %29 : vector<64x128xf32> to vector<64x128xbf16>
    %31 = tpu.concatenate %6, %9, %12, %15, %18, %21, %24, %27, %30 in 1 : vector<64x128xbf16>, vector<64x128xbf16>, vector<64x128xbf16>, vector<64x128xbf16>, vector<64x128xbf16>, vector<64x128xbf16>, vector<64x128xbf16>, vector<64x128xbf16>, vector<64x128xbf16> -> vector<64x1152xbf16>
    %c0_45 = arith.constant 0 : index
    %c0_46 = arith.constant 0 : index
    %32 = vector.load %arg2[%c0_45, %c0_46] : memref<1152x128xbf16, #tpu.memory_space<vmem>>, vector<1152x128xbf16>
    %cst_47 = arith.constant dense<0.000000e+00> : vector<64x128xf32>
    %33 = tpu.matmul %31, %32, %cst_47 {dimension_numbers = #tpu.dot_dimension_numbers<[1], [0], [0], [1], [0, 0, 1, 1], [], []>} : vector<64x1152xbf16>, vector<1152x128xbf16>, vector<64x128xf32> -> vector<64x128xf32>
    %34 = vector.shape_cast %33 : vector<64x128xf32> to vector<1x8x8x128xf32>
    %c0_48 = arith.constant 0 : index
    %c0_49 = arith.constant 0 : index
    %c0_50 = arith.constant 0 : index
    %c0_51 = arith.constant 0 : index
    %35 = vector.load %arg3[%c0_48, %c0_49, %c0_50, %c0_51] : memref<1x8x8x128xf32, #tpu.memory_space<vmem>>, vector<1x8x8x128xf32>
    tpu.vector_store %arg3[%c0_48, %c0_49, %c0_50, %c0_51], %34 {strides = array<i32>} : memref<1x8x8x128xf32, #tpu.memory_space<vmem>>, vector<1x8x8x128xf32>,
    %cst_52 = arith.constant dense<0.000000e+00> : vector<128xf32>
    %36 = vector.multi_reduction <add>, %33, %cst_52 [0] : vector<64x128xf32> to vector<128xf32>
    %37 = vector.shape_cast %36 : vector<128xf32> to vector<1x128xf32>
    %38 = arith.mulf %33, %33 : vector<64x128xf32>
    %cst_53 = arith.constant dense<0.000000e+00> : vector<128xf32>
    %39 = vector.multi_reduction <add>, %38, %cst_53 [0] : vector<64x128xf32> to vector<128xf32>
    %40 = vector.shape_cast %39 : vector<128xf32> to vector<1x128xf32>
    %41 = vector.shape_cast %37 : vector<1x128xf32> to vector<1x1x128xf32>
    %42 = vector.shape_cast %41 : vector<1x1x128xf32> to vector<1x1x128xf32>
    %43 = vector.broadcast %42 : vector<1x1x128xf32> to vector<1x8x128xf32>
    %c0_54 = arith.constant 0 : index
    %c0_55 = arith.constant 0 : index
    %c0_56 = arith.constant 0 : index
    %44 = vector.load %arg4[%c0_54, %c0_55, %c0_56] : memref<1x8x128xf32, #tpu.memory_space<vmem>>, vector<1x8x128xf32>
    tpu.vector_store %arg4[%c0_54, %c0_55, %c0_56], %43 {strides = array<i32>} : memref<1x8x128xf32, #tpu.memory_space<vmem>>, vector<1x8x128xf32>,
    %45 = vector.shape_cast %40 : vector<1x128xf32> to vector<1x1x128xf32>
    %46 = vector.shape_cast %45 : vector<1x1x128xf32> to vector<1x1x128xf32>
    %47 = vector.broadcast %46 : vector<1x1x128xf32> to vector<1x8x128xf32>
    %c0_57 = arith.constant 0 : index
    %c0_58 = arith.constant 0 : index
    %c0_59 = arith.constant 0 : index
    %48 = vector.load %arg5[%c0_57, %c0_58, %c0_59] : memref<1x8x128xf32, #tpu.memory_space<vmem>>, vector<1x8x128xf32>
    tpu.vector_store %arg5[%c0_57, %c0_58, %c0_59], %47 {strides = array<i32>} : memref<1x8x128xf32, #tpu.memory_space<vmem>>, vector<1x8x128xf32>,
    return
  }
  func.func @transform_0(%arg0: i32) -> (i32, i32, i32, i32) {
    %c0_i32 = arith.constant 0 : i32
    %c0_i32_0 = arith.constant 0 : i32
    %c0_i32_1 = arith.constant 0 : i32
    %c0_i32_2 = arith.constant 0 : i32
    return %arg0, %c0_i32, %c0_i32_0, %c0_i32_1 : i32, i32, i32, i32
  }
  func.func @transform_1(%arg0: i32) -> (i32, i32) {
    %c0_i32 = arith.constant 0 : i32
    %c0_i32_0 = arith.constant 0 : i32
    %c0_i32_1 = arith.constant 0 : i32
    return %c0_i32, %c0_i32_0 : i32, i32
  }
  func.func @transform_2(%arg0: i32) -> (i32, i32, i32, i32) {
    %c0_i32 = arith.constant 0 : i32
    %c0_i32_0 = arith.constant 0 : i32
    %c0_i32_1 = arith.constant 0 : i32
    %c0_i32_2 = arith.constant 0 : i32
    return %arg0, %c0_i32, %c0_i32_0, %c0_i32_1 : i32, i32, i32, i32
  }
  func.func @transform_3(%arg0: i32) -> (i32, i32, i32) {
    %c0_i32 = arith.constant 0 : i32
    %c0_i32_0 = arith.constant 0 : i32
    %c0_i32_1 = arith.constant 0 : i32
    return %arg0, %c0_i32, %c0_i32_0 : i32, i32, i32
  }
  func.func @transform_4(%arg0: i32) -> (i32, i32, i32) {
    %c0_i32 = arith.constant 0 : i32
    %c0_i32_0 = arith.constant 0 : i32
    %c0_i32_1 = arith.constant 0 : i32
    return %arg0, %c0_i32, %c0_i32_0 : i32, i32, i32
  }
}

</mosaic_0001>

<bundles_post_ra>
// kernel: tpu_custom_call.1
= control target key start
LH: loop header
LB: loop body
LE: loop exit
PB: predicated region body
PF: predicated region fallthrough
CT: control target
= control target key end

     0   :  { %10 = vsyncpa [#allocation4], 0  ;;  %s2955_s0 = inlined_call_operand.hbm [shape: f32[2,16,16,128], index: 0, kind: input, shape index: {}]   ;;  %s2956_s1 = inlined_call_operand.hbm [shape: bf16[1152,128], index: 1, kind: input, shape index: {}]   ;;  %s2957_s2 = inlined_call_operand.hbm [shape: f32[2,8,8,128], index: 2, kind: output, shape index: {0}]   ;;  %s2958_s3 = inlined_call_operand.hbm [shape: f32[2,8,128], index: 3, kind: output, shape index: {1}]   ;;  %s2959_s4 = inlined_call_operand.hbm [shape: f32[2,8,128], index: 4, kind: output, shape index: {2}]  }
   0x1   :  { %12 = vsyncpa [#allocation4 + $0x1], 0 }
   0x2   :  { %13 = vsyncpa [#allocation7], 0 }
   0x3   :  { %14 = vsyncpa [#allocation5], 0 }
   0x4   :  { %16 = vsyncpa [#allocation5 + $0x1], 0 }
   0x5   :  { %17 = vsyncpa [#allocation10], 0 }
   0x6   :  { %19 = vsyncpa [#allocation10 + $0x1], 0  ;;  %s2628_s15 = smov 0   ;;  %s2630_s16 = smov 0  }
   0x7   :  { %s2632_s17 = smov 0   ;;  %s2634_s18 = smov 0  }
   0x8 LB: > { %s2649_s19 = sadd.s32 4294967295, %s2593_s18   ;;  %s1929_s20 = sadd.s32 4294967294, %s2593_s18   ;;  %s2593_s18 = sphi %s2634_s18, %s2969_s18   ;;  %s2589_s17 = sphi %s2632_s17, %s2968_s17   ;;  %s2585_s16 = sphi %s2630_s16, %s2967_s16   ;;  %s2581_s15 = sphi %s2628_s15, %s2966_s15  }
   0x9   : > { %p45_p0 = scmp.ne.s32.totalorder %s2585_s16, %s2581_s15  ;;  %p46_p1 = scmp.eq.s32.totalorder %s2649_s19, 0 }
   0xa   : > { %p90_p2 = scmp.eq.s32.totalorder %s2649_s19, 1  ;;  %p96_p3 = scmp.eq.s32.totalorder %s1929_s20, 1 }
   0xb   : > { %p2660_p4 = por %p46_p1, %p45_p0  ;;  %p1930_p5 = scmp.ge.s32.totalorder %s2593_s18, 1 }
   0xc   : > { %p2665_p6 = por %p96_p3, %p45_p0  ;;  %p155_p7 = scmp.lt.s32.totalorder %s2593_s18, 3 }
   0xd   : > { %s166_s25 = sshll.u32 %s2956_s1, 4  ;;  %s2595_s27 = smov [#allocation6]   ;;  %s167_s25 = int_to_ptr.hbm [resolvable:$true] %s166_s25 }
   0xe   : > { %p2673_p8 = pnand %p1930_p5, %p155_p7  ;;  %s168_s28 = sshll.u32 %s2595_s27, 4  ;;  %s169_s28 = int_to_ptr.vmem [resolvable:$true] %s168_s28 }
   0xf   : > { %s2683_s29 = sadd.s32 1, %s2593_s18   ;;  %s2596_s30 = smov 64  }
  0x10   : > { %p2341_p9 = pneg %p2673_p8  ;;  %s2597_s5 = smov 4  }
  0x11   : > { %s29_s6 = ssub.s32 %s2593_s18, %s2683_s29  ;;  %s32_s7 = sadd.s32 1, %s2589_s17 }
  0x12   : > { %p2342_p10 = pnand %p2341_p9, %p46_p1  ;;  %p30_p12 = scmp.eq.s32.totalorder %s29_s6, 0 }
  0x13   : > { %p39_p13 = scmp.ne.s32.totalorder %s2589_s17, %s2585_s16  ;;  %p40_p0 = scmp.eq.s32.totalorder %s2593_s18, 0 }
  0x14   : > { %2344 = dma.hbm_to_vmem [thread:$0]  (!%p2342_p10), %s167_s25, 9216, %s169_s28, [#allocation7], %s2596_s30, %s2596_s30, %s2597_s5  }
  0x15   : > { %p2360_p3 = scmp.lt.s32.totalorder %s2593_s18, 2  ;;  %p41_p5 = por %p40_p0, %p39_p13 }
  0x16   : > { %s2693_s8 = scalar_select %p30_p12, %s2589_s17, %s32_s7  }
  0x17   : > { %p2697_p7 = por %p90_p2, %p39_p13  ;;  %s182_s10 = sand.u32 1, %s2589_s17  }
  0x18   : > { %s2239_s11 = sshll.u32 %s2593_s18, 8  ;;  %s1933_s12 = sshll.u32 %s182_s10, 8 }
  0x19   : > { %s191_s23 = scalar_lea.hbm %s2955_s0, %s2239_s11  ;;  %s186_s25 = scalar_lea.vmem [#allocation3], %s1933_s12 }
  0x1a   : > { %s192_s24 = sshll.u32 %s191_s23, 4  ;;  %s194_s27 = sshll.u32 %s186_s25, 4  ;;  %s193_s24 = int_to_ptr.hbm [resolvable:$true] %s192_s24  ;;  %s195_s27 = int_to_ptr.vmem [resolvable:$true] %s194_s27 }
  0x1b   : > { %p2708_p9 = pnand %p2360_p3, %p41_p5  ;;  %s183_s30 = scalar_lea.sflag [#allocation4], %s182_s10 }
  0x1c   : > { %s2433_s5 = sshra.s32 %s193_s24, 4  ;;  %s2440_s12 = scalar_lea.hbm %s2955_s0, 512  ;;  %s2434_s5 = int_to_ptr.hbm [resolvable:$true] %s2433_s5 }
  0x1d   : > { %s2435_s6 = scalar_lea.hbm %s2434_s5, 256  ;;  %p2437_p10 = pneg %p2708_p9 }
  0x1e   : > { %p2436_p2 = scmp.ne.s32.totalorder %s2434_s5, %s2435_s6  ;;  %p2441_p0 = scmp.lt.s32.totalorder %s2434_s5, %s2955_s0 }
  0x1f   : > { %p2442_p3 = scmp.lt.s32.totalorder %s2440_s12, %s2435_s6 }
  0x20   : > { %p2438_p12 = pnand %p2437_p10, %p2436_p2 }
  0x21   : > { %p2443_p5 = por %p2442_p3, %p2441_p0 }
  0x22   : > { %p2439_p13 = pneg %p2438_p12 }
  0x24   : > { %p2444_p11 = pnand %p2443_p5, %p2439_p13 }
  0x26   : > { %2447 = shalt.err (!%p2444_p11)
}
  0x27   : > { %s2598_s10 = smov 128   ;;  %s2599_s23 = smov 8  }
  0x28   : > { %2348 = dma.hbm_to_vmem [thread:$0]  (!%p2708_p9), %s193_s24, 4096, %s195_s27, %s183_s30, %s2598_s10, %s2598_s10, %s2599_s23  }
  0x29   : > { %206 = sbr.rel (%p2673_p8) target bundleno = 438 (0x1b6), region = 28  ;;  %s2725_s25 = sand.u32 (!%p2673_p8), 1, %s2585_s16  }
  0x2a   : > { %s1937_s7 = sshll.u32 (!%p2673_p8), %s2725_s25, 8  ;;  %s209_s5 = scalar_lea.sflag (!%p2673_p8), [#allocation4], %s2725_s25 }
  0x2b   : > { %s2729_s6 = scalar_lea.vmem (!%p2673_p8), [#allocation3], %s1937_s7 }
  0x2e   : > { %2564 = dma.done.wait (%p2660_p4), %s209_s5, 4096  }
  0x2f   : > { %2566 = vsyncadd (%p2660_p4), %s209_s5, 4294963200 }
  0x30   : > { %2568 = dma.done.wait (%p46_p1), [#allocation7], 9216  }
  0x31   : > { %2570 = vsyncadd (%p46_p1), [#allocation7], 4294958080  ;;  %v2600_v0 = vmov 0.0   ;;  %v2247_v1 = vld [vmem:[#allocation6 + $0x38] sm:$0xff]  ;;  %v2246_v3 = vld [vmem:[#allocation6 + $0x30] sm:$0xff]  ;;  %s1939_s21 = sshll.u32 %s2725_s25, 6 }
  0x32   : > { %253 = vst [vmem:[#allocation2] sm:$0xff] %v2600_v0  ;;  %v2263_v2 = vld [vmem:[#allocation6 + $0xb8] sm:$0xff]  ;;  %2313 = vmatpush.bf16.msra.mxu1 %v2247_v1  ;;  %1378 = vmatpush.bf16.msra.mxu0 %v2247_v1  ;;  %v2262_v4 = vld [vmem:[#allocation6 + $0xb0] sm:$0xff]  ;;  %v2245_v7 = vld [vmem:[#allocation6 + $0x28] sm:$0xff]  ;;  %s2859_s26 = scalar_lea.vmem [#allocation8], %s1939_s21  ;;  %s2312_s24 = sshll.u32 %s2649_s19, 6 }
  0x33   : > { %254 = vst [vmem:[#allocation2 + $0x8] sm:$0xff] %v2600_v0  ;;  %1436 = vmatpush.bf16.msra.mxu2 %v2263_v2  ;;  %v2271_v5 = vld [vmem:[#allocation6 + $0xf8] sm:$0xff]  ;;  %v2270_v6 = vld [vmem:[#allocation6 + $0xf0] sm:$0xff]  ;;  %v2261_v8 = vld [vmem:[#allocation6 + $0xa8] sm:$0xff]  ;;  %s1705_s30 = scalar_lea.hbm %s2957_s2, %s2312_s24  ;;  %s1706_s11 = sshll.u32 %s2859_s26, 4  ;;  %s1707_s11 = int_to_ptr.vmem [resolvable:$true] %s1706_s11 }
  0x34   : > { %255 = vst [vmem:[#allocation2 + $0x10] sm:$0x3] %v2600_v0  ;;  %1465 = vmatpush.bf16.msra.mxu3 %v2271_v5  ;;  %v2269_v9 = vld [vmem:[#allocation6 + $0xe8] sm:$0xff]  ;;  %v2244_v10 = vld [vmem:[#allocation6 + $0x20] sm:$0xff]  ;;  %v2243_v12 = vld [vmem:[#allocation6 + $0x18] sm:$0xff]  ;;  %s1708_s12 = sshll.u32 %s1705_s30, 4  ;;  %s1709_s12 = int_to_ptr.hbm [resolvable:$true] %s1708_s12 }
  0x35   : > { %256 = vst [vmem:[#allocation2 + $0x18] sm:$0xff] %v2600_v0  ;;  %v2260_v11 = vld [vmem:[#allocation6 + $0xa0] sm:$0xff]  ;;  %v2259_v13 = vld [vmem:[#allocation6 + $0x98] sm:$0xff]  ;;  %v2242_v14 = vld [vmem:[#allocation6 + $0x10] sm:$0xff]  ;;  %s1684_s13 = scalar_lea.sflag [#allocation5], %s2725_s25  ;;  %s2477_s14 = sshra.s32 %s1709_s12, 4  ;;  %s2478_s14 = int_to_ptr.hbm [resolvable:$true] %s2477_s14 }
  0x36   : > { %257 = vst [vmem:[#allocation2 + $0x20] sm:$0xff] %v2600_v0  ;;  %2314 = vmatpush.bf16.msra.mxu1 %v2246_v3  ;;  %1379 = vmatpush.bf16.msra.mxu0 %v2246_v3  ;;  %v2258_v15 = vld [vmem:[#allocation6 + $0x90] sm:$0xff]  ;;  %v2241_v16 = vld [vmem:[#allocation6 + $0x8] sm:$0xff]  ;;  %v2240_v17 = vld [vmem:[#allocation6] sm:$0xff]  ;;  %s2479_s10 = scalar_lea.hbm %s2478_s14, 64  ;;  %s2483_s5 = scalar_lea.hbm %s2957_s2, 128 }
  0x37   : > { %258 = vst [vmem:[#allocation2 + $0x28] sm:$0x3] %v2600_v0  ;;  %1437 = vmatpush.bf16.msra.mxu2 %v2262_v4  ;;  %v2255_v18 = vld [vmem:[#allocation6 + $0x78] sm:$0xff]  ;;  %v2257_v19 = vld [vmem:[#allocation6 + $0x88] sm:$0xff]  ;;  %v2268_v20 = vld [vmem:[#allocation6 + $0xe0] sm:$0xff]  ;;  %p2480_p1 = scmp.ne.s32.totalorder %s2478_s14, %s2479_s10  ;;  %p2484_p11 = scmp.lt.s32.totalorder %s2478_s14, %s2957_s2 }
  0x38   : > { %259 = vst [vmem:[#allocation2 + $0x30] sm:$0xff] %v2600_v0  ;;  %1466 = vmatpush.bf16.msra.mxu3 %v2270_v6  ;;  %v2254_v21 = vld [vmem:[#allocation6 + $0x70] sm:$0xff]  ;;  %v2256_v22 = vld [vmem:[#allocation6 + $0x80] sm:$0xff]  ;;  %v2267_v23 = vld [vmem:[#allocation6 + $0xd8] sm:$0xff]  ;;  %p2485_p9 = scmp.lt.s32.totalorder %s2483_s5, %s2479_s10 }
  0x39   : > { %260 = vst [vmem:[#allocation2 + $0x38] sm:$0xff] %v2600_v0  ;;  %v2279_v24 = vld [vmem:[#allocation6 + $0x138] sm:$0xff]  ;;  %v2278_v25 = vld [vmem:[#allocation6 + $0x130] sm:$0xff]  ;;  %v2253_v26 = vld [vmem:[#allocation6 + $0x68] sm:$0xff]  ;;  %p2481_p4 = pnand %p2480_p1, %p2697_p7 }
  0x3a   : > { %261 = vst [vmem:[#allocation2 + $0x40] sm:$0x3] %v2600_v0  ;;  %2315 = vmatpush.bf16.msra.mxu1 %v2245_v7  ;;  %1380 = vmatpush.bf16.msra.mxu0 %v2245_v7  ;;  %v2266_v27 = vld [vmem:[#allocation6 + $0xd0] sm:$0xff]  ;;  %v2277_v28 = vld [vmem:[#allocation6 + $0x128] sm:$0xff]  ;;  %v2252_v29 = vld [vmem:[#allocation6 + $0x60] sm:$0xff]  ;;  %p2486_p2 = por %p2485_p9, %p2484_p11 }
  0x3b   : > { %262 = vst [vmem:[#allocation2 + $0x48] sm:$0xff] %v2600_v0  ;;  %1438 = vmatpush.bf16.msra.mxu2 %v2261_v8  ;;  %v2265_v30 = vld [vmem:[#allocation6 + $0xc8] sm:$0xff]  ;;  %v321_v31 = vld [vmem:[%s2729_s6 + $0x70] sm:$0xff]  ;;  %v322_v32 = vld [vmem:[%s2729_s6 + $0x78] sm:$0xff]  ;;  %p2482_p8 = pneg %p2481_p4 }
  0x3c   : > { %263 = vst [vmem:[#allocation2 + $0x50] sm:$0xff] %v2600_v0  ;;  %1467 = vmatpush.bf16.msra.mxu3 %v2269_v9  ;;  %v325_v33 = vld [vmem:[%s2729_s6 + $0x90] sm:$0xff]  ;;  %v326_v34 = vld [vmem:[%s2729_s6 + $0x98] sm:$0xff]  ;;  %v2264_v38 = vld [vmem:[#allocation6 + $0xc0] sm:$0xff] }
  0x3d   : > { %264 = vst [vmem:[#allocation2 + $0x58] sm:$0x3] %v2600_v0  ;;  %v309_v35 = vld [vmem:[%s2729_s6 + $0x10] sm:$0xff]  ;;  %v2251_v36 = vld [vmem:[#allocation6 + $0x58] sm:$0xff]  ;;  %v2276_v39 = vld [vmem:[#allocation6 + $0x120] sm:$0xff]  ;;  %p2487_p10 = pnand %p2486_p2, %p2482_p8 }
  0x3e   : > { %265 = vst [vmem:[#allocation2 + $0x60] sm:$0xff] %v2600_v0  ;;  %2316 = vmatpush.bf16.msra.mxu1 %v2244_v10  ;;  %1381 = vmatpush.bf16.msra.mxu0 %v2244_v10  ;;  %v2295_v37 = vld [vmem:[#allocation6 + $0x1b8] sm:$0xff]  ;;  %v2250_v41 = vld [vmem:[#allocation6 + $0x50] sm:$0xff]  ;;  %v2249_v51 = vld [vmem:[#allocation6 + $0x48] sm:$0xff] }
  0x3f   : > { %266 = vst [vmem:[#allocation2 + $0x68] sm:$0xff] %v2600_v0  ;;  %1439 = vmatpush.bf16.msra.mxu2 %v2260_v11  ;;  %v310_v40 = vld [vmem:[%s2729_s6 + $0x18] sm:$0xff]  ;;  %v329_v42 = vld [vmem:[%s2729_s6 + $0xb0] sm:$0xff]  ;;  %v2248_v62 = vld [vmem:[#allocation6 + $0x40] sm:$0xff] }
  0x40   : > { %267 = vst [vmem:[#allocation2 + $0x70] sm:$0x3] %v2600_v0  ;;  %1468 = vmatpush.bf16.msra.mxu3 %v2268_v20  ;;  %v2294_v43 = vld [vmem:[#allocation6 + $0x1b0] sm:$0xff]  ;;  %v330_v44 = vld [vmem:[%s2729_s6 + $0xb8] sm:$0xff]  ;;  %v307_v1 = vld [vmem:[%s2729_s6] sm:$0xff] }
  0x41   : > { %268 = vst [vmem:[#allocation2 + $0x78] sm:$0xff] %v2600_v0  ;;  %v2275_v45 = vld [vmem:[#allocation6 + $0x118] sm:$0xff]  ;;  %v333_v48 = vld [vmem:[%s2729_s6 + $0xd0] sm:$0xff]  ;;  %v308_v2 = vld [vmem:[%s2729_s6 + $0x8] sm:$0xff] }
  0x42   : > { %269 = vst [vmem:[#allocation2 + $0x80] sm:$0xff] %v2600_v0  ;;  %2317 = vmatpush.bf16.msra.mxu1 %v2243_v12  ;;  %1382 = vmatpush.bf16.msra.mxu0 %v2243_v12  ;;  %v2303_v46 = vld [vmem:[#allocation6 + $0x1f8] sm:$0xff]  ;;  %v313_v52 = vld [vmem:[%s2729_s6 + $0x30] sm:$0xff]  ;;  %v2273_v6 = vld [vmem:[#allocation6 + $0x108] sm:$0xff] }
  0x43   : > { %270 = vst [vmem:[#allocation2 + $0x88] sm:$0x3] %v2600_v0  ;;  %1440 = vmatpush.bf16.msra.mxu2 %v2259_v13  ;;  %v372_v47 = vld [vmem:[#allocation2] ss:$2 sm:$0xff]  ;;  %v311_v11 = vld [vmem:[%s2729_s6 + $0x20] sm:$0xff]  ;;  %v312_v12 = vld [vmem:[%s2729_s6 + $0x28] sm:$0xff] }
  0x44   : > { %271 = vst [vmem:[#allocation2 + $0x90] sm:$0xff] %v2600_v0  ;;  %1469 = vmatpush.bf16.msra.mxu3 %v2267_v23  ;;  %v420_v49 = vld [vmem:[#allocation2 + $0x2] ss:$2 sm:$0xff]  ;;  %v387_v54 = vpack.c.bf16 %v372_v47, %v372_v47 }
  0x45   : > { %272 = vst [vmem:[#allocation2 + $0x98] sm:$0xff] %v2600_v0  ;;  %v334_v50 = vld [vmem:[%s2729_s6 + $0xd8] sm:$0xff]  ;;  %v2274_v56 = vld [vmem:[#allocation6 + $0x110] sm:$0xff]  ;;  %v435_v58 = vpack.c.bf16 %v420_v49, %v420_v49  ;;  %v2272_v23 = vld [vmem:[#allocation6 + $0x100] sm:$0xff] }
  0x46   : > { %273 = vst [vmem:[#allocation2 + $0xa0] sm:$0x3] %v2600_v0  ;;  %2318 = vmatpush.bf16.msra.mxu1 %v2242_v14  ;;  %1383 = vmatpush.bf16.msra.mxu0 %v2242_v14  ;;  %v314_v55 = vld [vmem:[%s2729_s6 + $0x38] sm:$0xff]  ;;  %v317_v59 = vld [vmem:[%s2729_s6 + $0x50] sm:$0xff]  ;;  %v594_v4 = vunpack.c.l.b16 %v387_v54  ;;  %v324_v49 = vld [vmem:[%s2729_s6 + $0x88] sm:$0xff] }
  0x47   : > { %274 = vst [vmem:[#allocation2 + $0xa8] sm:$0xff] %v2600_v0  ;;  %1441 = vmatpush.bf16.msra.mxu2 %v2258_v15  ;;  %v318_v61 = vld [vmem:[%s2729_s6 + $0x58] sm:$0xff]  ;;  %v642_v10 = vunpack.c.l.b16 %v435_v58 }
  0x48   : > { %275 = vst [vmem:[#allocation2 + $0xb0] sm:$0xff] %v2600_v0  ;;  %1470 = vmatpush.bf16.msra.mxu3 %v2266_v27 }
  0x49   : > { %276 = vst [vmem:[#allocation2 + $0xb8] sm:$0x3] %v2600_v0 }
  0x4a   : > { %277 = vst [vmem:[#allocation2 + $0xc0] sm:$0xff] %v2600_v0  ;;  %2319 = vmatpush.bf16.msra.mxu1 %v2241_v16  ;;  %1384 = vmatpush.bf16.msra.mxu0 %v2241_v16  ;;  %v315_v16 = vld [vmem:[%s2729_s6 + $0x40] sm:$0xff] }
  0x4b   : > { %278 = vst [vmem:[#allocation2 + $0xc8] sm:$0xff] %v2600_v0  ;;  %1442 = vmatpush.bf16.msra.mxu2 %v2257_v19 }
  0x4c   : > { %279 = vst [vmem:[#allocation2 + $0xd0] sm:$0x3] %v2600_v0  ;;  %1471 = vmatpush.bf16.msra.mxu3 %v2265_v30 }
  0x4d   : > { %280 = vst [vmem:[#allocation2 + $0xd8] sm:$0xff] %v2600_v0 }
  0x4e   : > { %281 = vst [vmem:[#allocation2 + $0xe0] sm:$0xff] %v2600_v0  ;;  %2320 = vmatpush.bf16.msra.mxu1 %v2240_v17  ;;  %1385 = vmatpush.bf16.msra.mxu0 %v2240_v17  ;;  %v316_v17 = vld [vmem:[%s2729_s6 + $0x48] sm:$0xff] }
  0x4f   : > { %282 = vst [vmem:[#allocation2 + $0xe8] sm:$0x3] %v2600_v0  ;;  %1443 = vmatpush.bf16.msra.mxu2 %v2256_v22  ;;  %v2293_v22 = vld [vmem:[#allocation6 + $0x1a8] sm:$0xff] }
  0x50   : > { %283 = vst [vmem:[#allocation2 + $0xf0] sm:$0xff] %v2600_v0  ;;  %1472 = vmatpush.bf16.msra.mxu3 %v2264_v38  ;;  %v2301_v38 = vld [vmem:[#allocation6 + $0x1e8] sm:$0xff] }
  0x51   : > { %284 = vst [vmem:[#allocation2 + $0xf8] sm:$0xff] %v2600_v0 }
  0x52   : > { %285 = vst [vmem:[#allocation2 + $0x100] sm:$0x3] %v2600_v0  ;;  %1407 = vmatpush.bf16.msrb.mxu1 %v2255_v18  ;;  %1494 = vmatpush.bf16.msrb.mxu0 %v2279_v24  ;;  %v319_v18 = vld [vmem:[%s2729_s6 + $0x60] sm:$0xff] }
  0x53   : > { %286 = vst [vmem:[#allocation2 + $0x108] sm:$0xff] %v2600_v0  ;;  %1552 = vmatpush.bf16.msrb.mxu2 %v2295_v37 }
  0x54   : > { %287 = vst [vmem:[#allocation2 + $0x110] sm:$0xff] %v2600_v0  ;;  %1581 = vmatpush.bf16.msrb.mxu3 %v2303_v46 }
  0x55   : > { %288 = vst [vmem:[#allocation2 + $0x118] sm:$0x3] %v2600_v0 }
  0x56   : > { %289 = vst [vmem:[#allocation2 + $0x120] sm:$0xff] %v2600_v0  ;;  %1408 = vmatpush.bf16.msrb.mxu1 %v2254_v21  ;;  %1495 = vmatpush.bf16.msrb.mxu0 %v2278_v25  ;;  %v2287_v21 = vld [vmem:[#allocation6 + $0x178] sm:$0xff] }
  0x57   : > { %290 = vst [vmem:[#allocation2 + $0x128] sm:$0xff] %v2600_v0  ;;  %1553 = vmatpush.bf16.msrb.mxu2 %v2294_v43 }
  0x58   : > { %291 = vst [vmem:[#allocation2 + $0x130] sm:$0x3] %v2600_v0 }
  0x59   : > { %292 = vst [vmem:[#allocation2 + $0x138] sm:$0xff] %v2600_v0 }
  0x5a   : > { %293 = vst [vmem:[#allocation2 + $0x140] sm:$0xff] %v2600_v0  ;;  %1409 = vmatpush.bf16.msrb.mxu1 %v2253_v26  ;;  %1496 = vmatpush.bf16.msrb.mxu0 %v2277_v28  ;;  %v320_v26 = vld [vmem:[%s2729_s6 + $0x68] sm:$0xff] }
  0x5b   : > { %294 = vst [vmem:[#allocation2 + $0x148] sm:$0x3] %v2600_v0  ;;  %1554 = vmatpush.bf16.msrb.mxu2 %v2293_v22 }
  0x5c   : > { %295 = vst [vmem:[#allocation2 + $0x150] sm:$0xff] %v2600_v0 }
  0x5d   : > { %296 = vst [vmem:[#allocation2 + $0x158] sm:$0xff] %v2600_v0 }
  0x5e   : > { %297 = vst [vmem:[#allocation2 + $0x160] sm:$0x3] %v2600_v0  ;;  %1410 = vmatpush.bf16.msrb.mxu1 %v2252_v29  ;;  %1497 = vmatpush.bf16.msrb.mxu0 %v2276_v39  ;;  %v2302_v29 = vld [vmem:[#allocation6 + $0x1f0] sm:$0xff] }
  0x5f   : > { %298 = vst [vmem:[#allocation2 + $0x168] sm:$0xff] %v2600_v0  ;;  %1582 = vmatpush.bf16.msrb.mxu3 %v2302_v29 }
  0x60   : > { %299 = vst [vmem:[#allocation2 + $0x170] sm:$0xff] %v2600_v0 }
  0x61   : > { %300 = vst [vmem:[#allocation2 + $0x178] sm:$0x3] %v2600_v0 }
  0x62   : > { %301 = vst [vmem:[#allocation2 + $0x180] sm:$0xff] %v2600_v0  ;;  %1411 = vmatpush.bf16.msrb.mxu1 %v2251_v36  ;;  %1498 = vmatpush.bf16.msrb.mxu0 %v2275_v45 }
  0x63   : > { %302 = vst [vmem:[#allocation2 + $0x188] sm:$0xff] %v2600_v0  ;;  %1583 = vmatpush.bf16.msrb.mxu3 %v2301_v38 }
  0x64   : > { %303 = vst [vmem:[#allocation2 + $0x190] sm:$0x3] %v2600_v0 }
  0x65   : > { %354 = vst [vmem:[#allocation2 + $0xc1] sm:$0xff] %v321_v31 }
  0x66   : > { %355 = vst [vmem:[#allocation2 + $0xc9] sm:$0xff] %v322_v32  ;;  %1412 = vmatpush.bf16.msrb.mxu1 %v2250_v41  ;;  %1499 = vmatpush.bf16.msrb.mxu0 %v2274_v56  ;;  %v2286_v32 = vld [vmem:[#allocation6 + $0x170] sm:$0xff] }
  0x67   : > { %358 = vst [vmem:[#allocation2 + $0xf1] sm:$0xff] %v325_v33 }
  0x68   : > { %359 = vst [vmem:[#allocation2 + $0xf9] sm:$0xff] %v326_v34 }
  0x69   : > { %342 = vst [vmem:[#allocation2 + $0x31] sm:$0xff] %v309_v35  ;;  %v2292_v35 = vld [vmem:[#allocation6 + $0x1a0] sm:$0xff] }
  0x6a   : > { %343 = vst [vmem:[#allocation2 + $0x39] sm:$0xff] %v310_v40  ;;  %1413 = vmatpush.bf16.msrb.mxu1 %v2249_v51  ;;  %1500 = vmatpush.bf16.msrb.mxu0 %v2273_v6  ;;  %v328_v51 = vld [vmem:[%s2729_s6 + $0xa8] sm:$0xff] }
  0x6b   : > { %362 = vst [vmem:[#allocation2 + $0x121] sm:$0xff] %v329_v42  ;;  %1555 = vmatpush.bf16.msrb.mxu2 %v2292_v35 }
  0x6c   : > { %363 = vst [vmem:[#allocation2 + $0x129] sm:$0xff] %v330_v44  ;;  %v323_v44 = vld [vmem:[%s2729_s6 + $0x80] sm:$0xff] }
  0x6d   : > { %v380_v53 = vld [vmem:[#allocation2 + $0xc0] ss:$2 sm:$0xff]  ;;  %366 = vst [vmem:[#allocation2 + $0x151] sm:$0xff] %v333_v48 }
  0x6e   : > { %v391_v57 = vpack.c.bf16 %v380_v53, %v380_v53  ;;  %367 = vst [vmem:[#allocation2 + $0x159] sm:$0xff] %v334_v50  ;;  %1414 = vmatpush.bf16.msrb.mxu1 %v2248_v62  ;;  %1501 = vmatpush.bf16.msrb.mxu0 %v2272_v23  ;;  %v327_v50 = vld [vmem:[%s2729_s6 + $0xa0] sm:$0xff] }
  0x6f   : > { %v382_v60 = vld [vmem:[#allocation2 + $0xf0] ss:$2 sm:$0xff]  ;;  %346 = vst [vmem:[#allocation2 + $0x61] sm:$0xff] %v313_v52 }
  0x70   : > { %v392_v63 = vpack.c.bf16 %v382_v60, %v382_v60  ;;  %v598_v0 = vunpack.c.l.b16 %v391_v57  ;;  %347 = vst [vmem:[#allocation2 + $0x69] sm:$0xff] %v314_v55  ;;  %v331_v23 = vld [vmem:[%s2729_s6 + $0xc0] sm:$0xff] }
  0x71   : > { %v374_v3 = vld [vmem:[#allocation2 + $0x30] ss:$2 sm:$0xff]  ;;  %350 = vst [vmem:[#allocation2 + $0x91] sm:$0xff] %v317_v59 }
  0x72   : > { %v422_v5 = vld [vmem:[#allocation2 + $0x32] ss:$2 sm:$0xff]  ;;  %v599_v7 = vunpack.c.l.b16 %v392_v63  ;;  %v388_v8 = vpack.c.bf16 %v374_v3, %v374_v3  ;;  %351 = vst [vmem:[#allocation2 + $0x99] sm:$0xff] %v318_v61  ;;  %v398_v3 = vld [vmem:[#allocation2 + $0x31] ss:$2 sm:$0xff] }
  0x73   : > { %v436_v9 = vpack.c.bf16 %v422_v5, %v422_v5  ;;  %340 = vst [vmem:[#allocation2 + $0x19] sm:$0xff] %v307_v1  ;;  %v384_v24 = vld [vmem:[#allocation2 + $0x120] ss:$2 sm:$0xff]  ;;  %v2285_v63 = vld [vmem:[#allocation6 + $0x168] sm:$0xff] }
  0x74   : > { %v604_v13 = vpack.c.b16 %v599_v7, %v598_v0  ;;  %v595_v14 = vunpack.c.l.b16 %v388_v8  ;;  %341 = vst [vmem:[#allocation2 + $0x21] sm:$0xff] %v308_v2  ;;  %v393_v33 = vpack.c.bf16 %v384_v24, %v384_v24  ;;  %v2291_v0 = vld [vmem:[#allocation6 + $0x198] sm:$0xff]  ;;  %v430_v8 = vld [vmem:[#allocation2 + $0xf2] ss:$2 sm:$0xff] }
  0x75   : > { %v643_v15 = vunpack.c.l.b16 %v436_v9  ;;  %344 = vst [vmem:[#allocation2 + $0x49] sm:$0xff] %v311_v11  ;;  %v386_v25 = vld [vmem:[#allocation2 + $0x150] ss:$2 sm:$0xff]  ;;  %v2816_v1 = vld [vmem:[#allocation6 + $0x238] sm:$0xff]  ;;  %1556 = vmatpush.bf16.msrb.mxu2 %v2291_v0 }
  0x76   : > { %1396 = vmatmul.bf16.vlgmr.msra.gmra.mxu1 %v604_v13  ;;  %v602_v19 = vpack.c.b16 %v595_v14, %v594_v4  ;;  %345 = vst [vmem:[#allocation2 + $0x51] sm:$0xff] %v312_v12  ;;  %v394_v34 = vpack.c.bf16 %v386_v25, %v386_v25  ;;  %v600_v45 = vunpack.c.l.b16 %v393_v33  ;;  %v396_v2 = vld [vmem:[#allocation2 + $0x1] ss:$2 sm:$0xff]  ;;  %v428_v4 = vld [vmem:[#allocation2 + $0xc2] ss:$2 sm:$0xff]  ;;  %v412_v14 = vpack.c.bf16 %v398_v3, %v398_v3  ;;  %v332_v24 = vld [vmem:[%s2729_s6 + $0xc8] sm:$0xff] }
  0x77   : > { %v650_v20 = vpack.c.b16 %v643_v15, %v642_v10  ;;  %348 = vst [vmem:[#allocation2 + $0x79] sm:$0xff] %v315_v16  ;;  %v376_v27 = vld [vmem:[#allocation2 + $0x60] ss:$2 sm:$0xff]  ;;  %1523 = vmatpush.bf16.msra.mxu1 %v2287_v21  ;;  %v2300_v9 = vld [vmem:[#allocation6 + $0x1e0] sm:$0xff]  ;;  %v411_v13 = vpack.c.bf16 %v396_v2, %v396_v2 }
  0x78   : > { %1386 = vmatmul.bf16.vlgmr.msra.gmra.mxu0 %v602_v19  ;;  %v424_v28 = vld [vmem:[#allocation2 + $0x62] ss:$2 sm:$0xff]  ;;  %349 = vst [vmem:[#allocation2 + $0x81] sm:$0xff] %v316_v17  ;;  %v389_v36 = vpack.c.bf16 %v376_v27, %v376_v27  ;;  %v601_v46 = vunpack.c.l.b16 %v394_v34  ;;  %1584 = vmatpush.bf16.msrb.mxu3 %v2300_v9  ;;  %v439_v17 = vpack.c.bf16 %v428_v4, %v428_v4  ;;  %v619_v27 = vunpack.c.l.b16 %v412_v14  ;;  %v404_v14 = vld [vmem:[#allocation2 + $0xc1] ss:$2 sm:$0xff] }
  0x79   : > { %1444 = vmatmul.bf16.vlgmr.msra.gmra.mxu2 %v650_v20  ;;  %v378_v30 = vld [vmem:[#allocation2 + $0x90] ss:$2 sm:$0xff]  ;;  %352 = vst [vmem:[#allocation2 + $0xa9] sm:$0xff] %v319_v18  ;;  %v437_v41 = vpack.c.bf16 %v424_v28, %v424_v28  ;;  %v2290_v12 = vld [vmem:[#allocation6 + $0x190] sm:$0xff]  ;;  %1610 = vmatpush.bf16.msra.mxu0 %v2816_v1  ;;  %v2299_v16 = vld [vmem:[#allocation6 + $0x1d8] sm:$0xff]  ;;  %v440_v18 = vpack.c.bf16 %v430_v8, %v430_v8 }
  0x7a   : > { %v426_v31 = vld [vmem:[#allocation2 + $0x92] ss:$2 sm:$0xff]  ;;  %353 = vst [vmem:[#allocation2 + $0xb1] sm:$0xff] %v320_v26  ;;  %v390_v39 = vpack.c.bf16 %v378_v30, %v378_v30  ;;  %v596_v52 = vunpack.c.l.b16 %v389_v36  ;;  %v605_v57 = vpack.c.b16 %v601_v46, %v600_v45  ;;  %1557 = vmatpush.bf16.msrb.mxu2 %v2290_v12  ;;  %v618_v26 = vunpack.c.l.b16 %v411_v13  ;;  %v2307_v12 = vld [vmem:[#allocation6 + $0x218] sm:$0xff] }
  0x7b   : > { %v443_v37 = vld [vmem:[#allocation2 + $0x18] ss:$2 sm:$0xff]  ;;  %v438_v42 = vpack.c.bf16 %v426_v31, %v426_v31  ;;  %1524 = vmatpush.bf16.msra.mxu1 %v2286_v32  ;;  %356 = vst [vmem:[#allocation2 + $0xd9] sm:$0xff] %v323_v44  ;;  %v644_v55 = vunpack.c.l.b16 %v437_v41  ;;  %v467_v7 = vld [vmem:[#allocation2 + $0x19] ss:$2 sm:$0xff]  ;;  %v2284_v11 = vld [vmem:[#allocation6 + $0x160] sm:$0xff]  ;;  %v646_v29 = vunpack.c.l.b16 %v439_v17  ;;  %v647_v33 = vunpack.c.l.b16 %v440_v18 }
  0x7c   : > { %v458_v40 = vpack.c.bf16 %v443_v37, %v443_v37  ;;  %357 = vst [vmem:[#allocation2 + $0xe1] sm:$0xff] %v324_v49  ;;  %v597_v53 = vunpack.c.l.b16 %v390_v39  ;;  %v2819_v15 = vld [vmem:[#allocation6 + $0x230] sm:$0xff]  ;;  %v482_v21 = vpack.c.bf16 %v467_v7, %v467_v7  ;;  %v335_v25 = vld [vmem:[%s2729_s6 + $0xe0] sm:$0xff]  ;;  %1585 = vmatpush.bf16.msrb.mxu3 %v2299_v16  ;;  %v336_v28 = vld [vmem:[%s2729_s6 + $0xe8] sm:$0xff]  ;;  %v626_v34 = vpack.c.b16 %v619_v27, %v618_v26 }
  0x7d   : > { %v445_v43 = vld [vmem:[#allocation2 + $0x48] ss:$2 sm:$0xff]  ;;  %v645_v56 = vunpack.c.l.b16 %v438_v42  ;;  %360 = vst [vmem:[#allocation2 + $0x109] sm:$0xff] %v327_v50  ;;  %v469_v10 = vld [vmem:[#allocation2 + $0x49] ss:$2 sm:$0xff]  ;;  %1611 = vmatpush.bf16.msra.mxu0 %v2819_v15  ;;  %v652_v36 = vpack.c.b16 %v647_v33, %v646_v29  ;;  %v2289_v39 = vld [vmem:[#allocation6 + $0x188] sm:$0xff] }
  0x7e   : > { %v459_v47 = vpack.c.bf16 %v445_v43, %v445_v43  ;;  %v666_v48 = vunpack.c.l.b16 %v458_v40  ;;  %361 = vst [vmem:[#allocation2 + $0x111] sm:$0xff] %v328_v51  ;;  %v603_v59 = vpack.c.b16 %v597_v53, %v596_v52  ;;  %v483_v22 = vpack.c.bf16 %v469_v10, %v469_v10  ;;  %v400_v40 = vld [vmem:[#allocation2 + $0x61] ss:$2 sm:$0xff]  ;;  %v2309_v42 = vld [vmem:[#allocation6 + $0x228] sm:$0xff]  ;;  %1558 = vmatpush.bf16.msrb.mxu2 %v2289_v39  ;;  %v2288_v45 = vld [vmem:[#allocation6 + $0x180] sm:$0xff] }
  0x7f   : > { %v651_v60 = vpack.c.b16 %v645_v56, %v644_v55  ;;  %v447_v61 = vld [vmem:[#allocation2 + $0x78] ss:$2 sm:$0xff]  ;;  %1525 = vmatpush.bf16.msra.mxu1 %v2285_v63  ;;  %364 = vst [vmem:[#allocation2 + $0x139] sm:$0xff] %v331_v23  ;;  %v690_v31 = vunpack.c.l.b16 %v482_v21  ;;  %v2283_v41 = vld [vmem:[#allocation6 + $0x158] sm:$0xff]  ;;  %v402_v43 = vld [vmem:[#allocation2 + $0x91] ss:$2 sm:$0xff] }
  0x80   : > { %v667_v54 = vunpack.c.l.b16 %v459_v47  ;;  %v460_v5 = vpack.c.bf16 %v447_v61, %v447_v61  ;;  %365 = vst [vmem:[#allocation2 + $0x141] sm:$0xff] %v332_v24  ;;  %v691_v32 = vunpack.c.l.b16 %v483_v22  ;;  %v471_v44 = vld [vmem:[#allocation2 + $0x79] ss:$2 sm:$0xff]  ;;  %v432_v49 = vld [vmem:[#allocation2 + $0x122] ss:$2 sm:$0xff]  ;;  %v414_v55 = vpack.c.bf16 %v402_v43, %v402_v43 }
  0x81   : > { %v449_v62 = vld [vmem:[#allocation2 + $0xa8] ss:$2 sm:$0xff]  ;;  %368 = vst [vmem:[#allocation2 + $0x169] sm:$0xff] %v335_v25  ;;  %v2298_v50 = vld [vmem:[#allocation6 + $0x1d0] sm:$0xff]  ;;  %1612 = vmatpush.bf16.msra.mxu0 %v2309_v42  ;;  %v2297_v56 = vld [vmem:[#allocation6 + $0x1c8] sm:$0xff]  ;;  %v441_v61 = vpack.c.bf16 %v432_v49, %v432_v49  ;;  %v415_v24 = vpack.c.bf16 %v404_v14, %v404_v14 }
  0x82   : > { %v674_v58 = vpack.c.b16 %v667_v54, %v666_v48  ;;  %v461_v6 = vpack.c.bf16 %v449_v62, %v449_v62  ;;  %v668_v19 = vunpack.c.l.b16 %v460_v5  ;;  %369 = vst [vmem:[#allocation2 + $0x171] sm:$0xff] %v336_v28  ;;  %v698_v35 = vpack.c.b16 %v691_v32, %v690_v31  ;;  %v473_v48 = vld [vmem:[#allocation2 + $0xa9] ss:$2 sm:$0xff]  ;;  %v434_v51 = vld [vmem:[#allocation2 + $0x152] ss:$2 sm:$0xff]  ;;  %1586 = vmatpush.bf16.msrb.mxu3 %v2298_v50 }
  0x83   : > { %1526 = vmatpush.bf16.msra.mxu1 %v2284_v11  ;;  %v451_v37 = vld [vmem:[#allocation2 + $0xd8] ss:$2 sm:$0xff]  ;;  %v2308_v53 = vld [vmem:[#allocation6 + $0x220] sm:$0xff]  ;;  %v413_v54 = vpack.c.bf16 %v400_v40, %v400_v40  ;;  %1559 = vmatpush.bf16.msrb.mxu2 %v2288_v45  ;;  %v442_v62 = vpack.c.bf16 %v434_v51, %v434_v51  ;;  %v621_v0 = vunpack.c.l.b16 %v414_v55  ;;  %v648_v5 = vunpack.c.l.b16 %v441_v61 }
  0x84   : > { %1473 = vmatmul.bf16.vlgmr.msra.gmra.mxu3 %v674_v58  ;;  %v669_v20 = vunpack.c.l.b16 %v461_v6  ;;  %v462_v46 = vpack.c.bf16 %v451_v37, %v451_v37  ;;  %v2282_v52 = vld [vmem:[#allocation6 + $0x150] sm:$0xff]  ;;  %v485_v58 = vpack.c.bf16 %v473_v48, %v473_v48  ;;  %v2296_v13 = vld [vmem:[#allocation6 + $0x1c0] sm:$0xff]  ;;  %v2305_v32 = vld [vmem:[#allocation6 + $0x208] sm:$0xff]  ;;  %v622_v33 = vunpack.c.l.b16 %v415_v24 }
  0x85   : > { %v453_v38 = vld [vmem:[#allocation2 + $0x108] ss:$2 sm:$0xff]  ;;  %1613 = vmatpush.bf16.msra.mxu0 %v2308_v53  ;;  %v620_v63 = vunpack.c.l.b16 %v413_v54  ;;  %v649_v6 = vunpack.c.l.b16 %v442_v62  ;;  %v406_v16 = vld [vmem:[#allocation2 + $0xf1] ss:$2 sm:$0xff]  ;;  %v2306_v23 = vld [vmem:[#allocation6 + $0x210] sm:$0xff] }
  0x86   : > { %1401 = vmatmul.bf16.gmra.mxu1 %v605_v57  ;;  %v675_v30 = vpack.c.b16 %v669_v20, %v668_v19  ;;  %v463_v47 = vpack.c.bf16 %v453_v38, %v453_v38  ;;  %v484_v57 = vpack.c.bf16 %v471_v44, %v471_v44  ;;  %1587 = vmatpush.bf16.msrb.mxu3 %v2297_v56  ;;  %v693_v4 = vunpack.c.l.b16 %v485_v58  ;;  %v475_v19 = vld [vmem:[#allocation2 + $0xd9] ss:$2 sm:$0xff]  ;;  %v477_v20 = vld [vmem:[#allocation2 + $0x109] ss:$2 sm:$0xff]  ;;  %v517_v21 = vld [vmem:[#allocation2 + $0x60] ss:$2 sm:$0xff] }
  0x87   : > { %1527 = vmatpush.bf16.msra.mxu1 %v2283_v41  ;;  %2321 = vmatpush.bf16.msra.mxu2 %v2816_v1  ;;  %v627_v7 = vpack.c.b16 %v621_v0, %v620_v63  ;;  %v653_v9 = vpack.c.b16 %v649_v6, %v648_v5  ;;  %v455_v10 = vld [vmem:[#allocation2 + $0x138] ss:$2 sm:$0xff]  ;;  %v2280_v22 = vld [vmem:[#allocation6 + $0x140] sm:$0xff]  ;;  %v416_v25 = vpack.c.bf16 %v406_v16, %v406_v16  ;;  %v541_v44 = vld [vmem:[#allocation2 + $0x61] ss:$2 sm:$0xff] }
  0x88   : > { %1391 = vmatmul.bf16.gmra.mxu0 %v603_v59  ;;  %v670_v59 = vunpack.c.l.b16 %v462_v46  ;;  %v692_v2 = vunpack.c.l.b16 %v484_v57  ;;  %v2281_v1 = vld [vmem:[#allocation6 + $0x148] sm:$0xff]  ;;  %v464_v17 = vpack.c.bf16 %v455_v10, %v455_v10  ;;  %v486_v26 = vpack.c.bf16 %v475_v19, %v475_v19  ;;  %v2304_v45 = vld [vmem:[#allocation6 + $0x200] sm:$0xff]  ;;  %v408_v46 = vld [vmem:[#allocation2 + $0x121] ss:$2 sm:$0xff] }
  0x89   : > { %1449 = vmatmul.bf16.gmra.mxu2 %v651_v60  ;;  %v671_v60 = vunpack.c.l.b16 %v463_v47  ;;  %v457_v11 = vld [vmem:[#allocation2 + $0x168] ss:$2 sm:$0xff]  ;;  %1614 = vmatpush.bf16.msra.mxu0 %v2307_v12  ;;  %v487_v27 = vpack.c.bf16 %v477_v20, %v477_v20  ;;  %v531_v31 = vpack.c.bf16 %v517_v21, %v517_v21  ;;  %v539_v43 = vld [vmem:[#allocation2 + $0x31] ss:$2 sm:$0xff]  ;;  %v555_v51 = vpack.c.bf16 %v541_v44, %v541_v44 }
  0x8a   : > { %v699_v8 = vpack.c.b16 %v693_v4, %v692_v2  ;;  %v465_v18 = vpack.c.bf16 %v457_v11, %v457_v11  ;;  %1588 = vmatpush.bf16.msrb.mxu3 %v2296_v13  ;;  %v672_v28 = vunpack.c.l.b16 %v464_v17  ;;  %v410_v47 = vld [vmem:[#allocation2 + $0x151] ss:$2 sm:$0xff]  ;;  %v554_v50 = vpack.c.bf16 %v539_v43, %v539_v43  ;;  %v337_v2 = vld [vmem:[%s2729_s6 + $0xf0] sm:$0xff]  ;;  %v493_v13 = vld [vmem:[#allocation2 + $0x4a] ss:$2 sm:$0xff] }
  0x8b   : > { %1528 = vmatpush.bf16.msra.mxu1 %v2282_v52  ;;  %v676_v3 = vpack.c.b16 %v671_v60, %v670_v59  ;;  %2322 = vmatpush.bf16.msra.mxu2 %v2819_v15  ;;  %v515_v15 = vld [vmem:[#allocation2 + $0x30] ss:$2 sm:$0xff]  ;;  %v695_v37 = vunpack.c.l.b16 %v487_v27  ;;  %v739_v39 = vunpack.c.l.b16 %v531_v31  ;;  %v479_v48 = vld [vmem:[#allocation2 + $0x139] ss:$2 sm:$0xff]  ;;  %v481_v49 = vld [vmem:[#allocation2 + $0x169] ss:$2 sm:$0xff]  ;;  %v417_v54 = vpack.c.bf16 %v408_v46, %v408_v46 }
  0x8c   : > { %v673_v29 = vunpack.c.l.b16 %v465_v18  ;;  %v519_v52 = vld [vmem:[#allocation2 + $0x90] ss:$2 sm:$0xff]  ;;  %v418_v55 = vpack.c.bf16 %v410_v47, %v410_v47  ;;  %v488_v56 = vpack.c.bf16 %v479_v48, %v479_v48  ;;  %v489_v57 = vpack.c.bf16 %v481_v49, %v481_v49  ;;  %370 = vst [vmem:[#allocation2 + $0x181] sm:$0xff] %v337_v2  ;;  %v543_v11 = vld [vmem:[#allocation2 + $0x91] ss:$2 sm:$0xff] }
  0x8d   : > { %1615 = vmatpush.bf16.msra.mxu0 %v2306_v23  ;;  %v762_v58 = vunpack.c.l.b16 %v554_v50  ;;  %v763_v59 = vunpack.c.l.b16 %v555_v51  ;;  %v532_v60 = vpack.c.bf16 %v519_v52, %v519_v52  ;;  %v624_v62 = vunpack.c.l.b16 %v417_v54  ;;  %v563_v17 = vld [vmem:[#allocation2 + $0x32] ss:$2 sm:$0xff]  ;;  %v565_v18 = vld [vmem:[#allocation2 + $0x62] ss:$2 sm:$0xff] }
  0x8e   : > { %v625_v63 = vunpack.c.l.b16 %v418_v55  ;;  %v696_v0 = vunpack.c.l.b16 %v488_v56  ;;  %v697_v4 = vunpack.c.l.b16 %v489_v57  ;;  %v556_v14 = vpack.c.bf16 %v543_v11, %v543_v11  ;;  %v523_v19 = vld [vmem:[#allocation2 + $0xf0] ss:$2 sm:$0xff]  ;;  %v525_v20 = vld [vmem:[#allocation2 + $0x120] ss:$2 sm:$0xff] }
  0x8f   : > { %2323 = vmatpush.bf16.msra.mxu2 %v2309_v42  ;;  %1529 = vmatpush.bf16.msra.mxu1 %v2281_v1  ;;  %v770_v5 = vpack.c.b16 %v763_v59, %v762_v58  ;;  %v740_v6 = vunpack.c.l.b16 %v532_v60  ;;  %v545_v1 = vld [vmem:[#allocation2 + $0xc1] ss:$2 sm:$0xff]  ;;  %v507_v21 = vpack.c.bf16 %v493_v13, %v493_v13  ;;  %v535_v27 = vpack.c.bf16 %v525_v20, %v525_v20  ;;  %v567_v44 = vld [vmem:[#allocation2 + $0x92] ss:$2 sm:$0xff] }
  0x90   : > { %v557_v16 = vpack.c.bf16 %v545_v1, %v545_v1  ;;  %v764_v24 = vunpack.c.l.b16 %v556_v14  ;;  %v527_v46 = vld [vmem:[#allocation2 + $0x150] ss:$2 sm:$0xff]  ;;  %v580_v50 = vpack.c.bf16 %v567_v44, %v567_v44 }
  0x91   : > { %1616 = vmatpush.bf16.msra.mxu0 %v2305_v32  ;;  %v536_v54 = vpack.c.bf16 %v527_v46, %v527_v46  ;;  %v575_v11 = vld [vmem:[#allocation2 + $0x152] ss:$2 sm:$0xff] }
  0x92   : > { %v788_v58 = vunpack.c.l.b16 %v580_v50 }
  0x93   : > { %2324 = vmatpush.bf16.msra.mxu2 %v2308_v53  ;;  %1530 = vmatpush.bf16.msra.mxu1 %v2280_v22  ;;  %v521_v53 = vld [vmem:[#allocation2 + $0xc0] ss:$2 sm:$0xff]  ;;  %v578_v22 = vpack.c.bf16 %v563_v17, %v563_v17 }
  0x94   : > { %1478 = vmatmul.bf16.gmra.mxu3 %v675_v30  ;;  %v530_v30 = vpack.c.bf16 %v515_v15, %v515_v15  ;;  %v533_v61 = vpack.c.bf16 %v521_v53, %v521_v53 }
  0x95   : > { %1617 = vmatpush.bf16.msra.mxu0 %v2304_v45 }
  0x96   : > { %1415 = vmatmul.bf16.vlgmr.msrb.gmra.mxu1 %v626_v34  ;;  %v623_v34 = vunpack.c.l.b16 %v416_v25  ;;  %v738_v38 = vunpack.c.l.b16 %v530_v30  ;;  %v765_v25 = vunpack.c.l.b16 %v557_v16  ;;  %v786_v30 = vunpack.c.l.b16 %v578_v22 }
  0x97   : > { %2325 = vmatpush.bf16.msra.mxu2 %v2307_v12  ;;  %v491_v12 = vld [vmem:[#allocation2 + $0x1a] ss:$2 sm:$0xff] }
  0x98   : > { %1502 = vmatmul.bf16.vlgmr.msrb.gmra.mxu0 %v698_v35  ;;  %v694_v35 = vunpack.c.l.b16 %v486_v26  ;;  %v628_v40 = vpack.c.b16 %v623_v34, %v622_v33  ;;  %v746_v42 = vpack.c.b16 %v739_v39, %v738_v38  ;;  %v506_v15 = vpack.c.bf16 %v491_v12, %v491_v12  ;;  %v547_v38 = vld [vmem:[#allocation2 + $0xf1] ss:$2 sm:$0xff]  ;;  %v549_v39 = vld [vmem:[#allocation2 + $0x121] ss:$2 sm:$0xff] }
  0x99   : > { %1454 = vmatmul.bf16.gmra.mxu2 %v652_v36  ;;  %v677_v36 = vpack.c.b16 %v673_v29, %v672_v28  ;;  %v534_v26 = vpack.c.bf16 %v523_v19, %v523_v19  ;;  %v715_v29 = vunpack.c.l.b16 %v507_v21  ;;  %v771_v31 = vpack.c.b16 %v765_v25, %v764_v24 }
  0x9a   : > { %v700_v41 = vpack.c.b16 %v695_v37, %v694_v35  ;;  %v714_v28 = vunpack.c.l.b16 %v506_v15  ;;  %v743_v34 = vunpack.c.l.b16 %v535_v27  ;;  %v559_v43 = vpack.c.bf16 %v549_v39, %v549_v39 }
  0x9b   : > { %2326 = vmatpush.bf16.msra.mxu2 %v2306_v23  ;;  %v579_v23 = vpack.c.bf16 %v565_v18, %v565_v18  ;;  %v742_v33 = vunpack.c.l.b16 %v534_v26  ;;  %v584_v19 = vpack.c.bf16 %v575_v11, %v575_v11 }
  0x9c   : > { %v722_v35 = vpack.c.b16 %v715_v29, %v714_v28  ;;  %v767_v53 = vunpack.c.l.b16 %v559_v43 }
  0x9d   : > { %v748_v37 = vpack.c.b16 %v743_v34, %v742_v33  ;;  %v792_v25 = vunpack.c.l.b16 %v584_v19  ;;  %v505_v33 = vld [vmem:[#allocation2 + $0x16a] ss:$2 sm:$0xff] }
  0x9f   : > { %2327 = vmatpush.bf16.msra.mxu2 %v2305_v32  ;;  %v787_v32 = vunpack.c.l.b16 %v579_v23 }
  0xa3   : > { %2328 = vmatpush.bf16.msra.mxu2 %v2304_v45  ;;  %v569_v45 = vld [vmem:[#allocation2 + $0xc2] ss:$2 sm:$0xff] }
  0xa4   : > { %1483 = vmatmul.bf16.gmra.mxu3 %v676_v3  ;;  %v338_v3 = vld [vmem:[%s2729_s6 + $0xf8] sm:$0xff]  ;;  %v581_v51 = vpack.c.bf16 %v569_v45, %v569_v45 }
  0xa5   : > { %371 = vst [vmem:[#allocation2 + $0x189] sm:$0xff] %v338_v3  ;;  %v551_v3 = vld [vmem:[#allocation2 + $0x151] ss:$2 sm:$0xff] }
  0xa6   : > { %1420 = vmatmul.bf16.gmra.mxu1 %v627_v7  ;;  %v741_v7 = vunpack.c.l.b16 %v533_v61  ;;  %v789_v60 = vunpack.c.l.b16 %v581_v51  ;;  %v744_v61 = vunpack.c.l.b16 %v536_v54 }
  0xa8   : > { %1507 = vmatmul.bf16.gmra.mxu0 %v699_v8  ;;  %v629_v8 = vpack.c.b16 %v625_v63, %v624_v62  ;;  %v747_v10 = vpack.c.b16 %v741_v7, %v740_v6  ;;  %v501_v6 = vld [vmem:[#allocation2 + $0x10a] ss:$2 sm:$0xff]  ;;  %v560_v7 = vpack.c.bf16 %v551_v3, %v551_v3 }
  0xa9   : > { %1459 = vmatmul.bf16.gmra.mxu2 %v653_v9  ;;  %v701_v9 = vpack.c.b16 %v697_v4, %v696_v0  ;;  %v795_v0 = vpack.c.b16 %v789_v60, %v788_v58  ;;  %v511_v13 = vpack.c.bf16 %v501_v6, %v501_v6 }
  0xaa   : > { %v768_v17 = vunpack.c.l.b16 %v560_v7 }
  0xab   : > { %v719_v21 = vunpack.c.l.b16 %v511_v13 }
  0xac   : > { %v529_v47 = vld [vmem:[#allocation2 + $0x180] ss:$2 sm:$0xff]  ;;  %v553_v4 = vld [vmem:[#allocation2 + $0x181] ss:$2 sm:$0xff] }
  0xad   : > { %v537_v55 = vpack.c.bf16 %v529_v47, %v529_v47  ;;  %v577_v1 = vld [vmem:[#allocation2 + $0x182] ss:$2 sm:$0xff] }
  0xae   : > { %v585_v20 = vpack.c.bf16 %v577_v1, %v577_v1 }
  0xaf   : > { %v745_v62 = vunpack.c.l.b16 %v537_v55 }
  0xb0   : > { %v793_v26 = vunpack.c.l.b16 %v585_v20 }
  0xb1   : > { %v749_v2 = vpack.c.b16 %v745_v62, %v744_v61 }
  0xb4   : > { %1488 = vmatmul.bf16.gmra.mxu3 %v677_v36  ;;  %v794_v36 = vpack.c.b16 %v787_v32, %v786_v30  ;;  %v797_v30 = vpack.c.b16 %v793_v26, %v792_v25  ;;  %v503_v32 = vld [vmem:[#allocation2 + $0x13a] ss:$2 sm:$0xff] }
  0xb5   : > { %v512_v34 = vpack.c.bf16 %v503_v32, %v503_v32 }
  0xb6   : > { %1425 = vmatmul.bf16.gmra.mxu1 %v628_v40  ;;  %v495_v40 = vld [vmem:[#allocation2 + $0x7a] ss:$2 sm:$0xff] }
  0xb7   : > { %v508_v48 = vpack.c.bf16 %v495_v40, %v495_v40  ;;  %v720_v39 = vunpack.c.l.b16 %v512_v34 }
  0xb8   : > { %1512 = vmatmul.bf16.gmra.mxu0 %v700_v41  ;;  %v497_v41 = vld [vmem:[#allocation2 + $0xaa] ss:$2 sm:$0xff] }
  0xb9   : > { %1560 = vmatmul.bf16.vlgmr.msrb.gmra.mxu2 %v746_v42  ;;  %v558_v42 = vpack.c.bf16 %v547_v38, %v547_v38  ;;  %v509_v49 = vpack.c.bf16 %v497_v41, %v497_v41  ;;  %v716_v56 = vunpack.c.l.b16 %v508_v48 }
  0xbb   : > { %v766_v52 = vunpack.c.l.b16 %v558_v42  ;;  %v717_v57 = vunpack.c.l.b16 %v509_v49 }
  0xbd   : > { %v772_v59 = vpack.c.b16 %v767_v53, %v766_v52  ;;  %v723_v63 = vpack.c.b16 %v717_v57, %v716_v56 }
  0xc4   : > { %1589 = vmatmul.bf16.vlgmr.msrb.gmra.mxu3 %v770_v5  ;;  %v499_v5 = vld [vmem:[#allocation2 + $0xda] ss:$2 sm:$0xff] }
  0xc5   : > { %v510_v12 = vpack.c.bf16 %v499_v5, %v499_v5 }
  0xc6   : > { %1430 = vmatmul.bf16.gmra.mxu1 %v629_v8  ;;  %v561_v8 = vpack.c.bf16 %v553_v4, %v553_v4 }
  0xc7   : > { %v718_v15 = vunpack.c.l.b16 %v510_v12 }
  0xc8   : > { %1517 = vmatmul.bf16.gmra.mxu0 %v701_v9  ;;  %v571_v9 = vld [vmem:[#allocation2 + $0xf2] ss:$2 sm:$0xff]  ;;  %v769_v18 = vunpack.c.l.b16 %v561_v8 }
  0xc9   : > { %1565 = vmatmul.bf16.gmra.mxu2 %v747_v10  ;;  %v573_v10 = vld [vmem:[#allocation2 + $0x122] ss:$2 sm:$0xff]  ;;  %v582_v14 = vpack.c.bf16 %v571_v9, %v571_v9  ;;  %v724_v27 = vpack.c.b16 %v719_v21, %v718_v15 }
  0xca   : > { %v583_v16 = vpack.c.bf16 %v573_v10, %v573_v10  ;;  %v773_v23 = vpack.c.b16 %v769_v18, %v768_v17 }
  0xcb   : > { %v790_v22 = vunpack.c.l.b16 %v582_v14 }
  0xcc   : > { %v791_v24 = vunpack.c.l.b16 %v583_v16 }
  0xce   : > { %v796_v29 = vpack.c.b16 %v791_v24, %v790_v22 }
  0xd4   : > { %1594 = vmatmul.bf16.gmra.mxu3 %v771_v31 }
  0xd6   : > { %1531 = vmatmul.bf16.vlgmr.msra.gmra.mxu1 %v722_v35  ;;  %v513_v35 = vpack.c.bf16 %v505_v33, %v505_v33 }
  0xd8   : > { %1618 = vmatmul.bf16.vlgmr.msra.gmra.mxu0 %v794_v36  ;;  %v721_v40 = vunpack.c.l.b16 %v513_v35 }
  0xd9   : > { %1570 = vmatmul.bf16.gmra.mxu2 %v748_v37 }
  0xda   : > { %v725_v41 = vpack.c.b16 %v721_v40, %v720_v39 }
  0xe4   : > { %1599 = vmatmul.bf16.gmra.mxu3 %v772_v59 }
  0xe6   : > { %1536 = vmatmul.bf16.gmra.mxu1 %v723_v63 }
  0xe8   : > { %1623 = vmatmul.bf16.gmra.mxu0 %v795_v0 }
  0xe9   : > { %1575 = vmatmul.bf16.gmra.mxu2 %v749_v2 }
  0xf3   : > { %v1397_v28 = vpop.f32.mrf.mxu1 }
  0xf4   : > { %1604 = vmatmul.bf16.gmra.mxu3 %v773_v23 }
  0xf5   : > { %v1387_v31 = vpop.f32.mrf.mxu0 }
  0xf6   : > { %1541 = vmatmul.bf16.gmra.mxu1 %v724_v27 }
  0xf8   : > { %1628 = vmatmul.bf16.gmra.mxu0 %v796_v29 }
  0xf9   : > { %1633 = vmatmul.bf16.vlgmr.msra.gmra.mxu2 %v797_v30 }
  0xfb   : > { %v1399_v36 = vpop.f32.mrf.mxu1 }
  0xfc   : > { %v1445_v37 = vpop.f32.mrf.mxu2 }
  0xfd   : > { %v1389_v38 = vpop.f32.mrf.mxu0 }
 0x103   : > { %v1402_v42 = vpop.f32.mrf.mxu1 }
 0x104   : > { %v1447_v43 = vpop.f32.mrf.mxu2 }
 0x105   : > { %v1392_v44 = vpop.f32.mrf.mxu0 }
 0x106   : > { %1546 = vmatmul.bf16.gmra.mxu1 %v725_v41 }
 0x107   : > { %v1474_v45 = vpop.f32.mrf.mxu3 }
 0x10b   : > { %v1404_v46 = vpop.f32.mrf.mxu1 }
 0x10c   : > { %v1450_v47 = vpop.f32.mrf.mxu2 }
 0x10d   : > { %v1394_v48 = vpop.f32.mrf.mxu0 }
 0x10f   : > { %v1476_v49 = vpop.f32.mrf.mxu3 }
 0x113   : > { %v1416_v50 = vpop.f32.mrf.mxu1 }
 0x114   : > { %v1452_v51 = vpop.f32.mrf.mxu2  ;;  %v1417_v52 = vadd.f32 %v1416_v50, %v1387_v31 }
 0x115   : > { %v1503_v53 = vpop.f32.mrf.mxu0 }
 0x116   : > { %v1446_v54 = vadd.f32 %v1445_v37, %v1417_v52 }
 0x117   : > { %v1479_v55 = vpop.f32.mrf.mxu3 }
 0x118   : > { %v1475_v32 = vadd.f32 %v1474_v45, %v1446_v54 }
 0x11a   : > { %v1504_v34 = vadd.f32 %v1503_v53, %v1475_v32 }
 0x11b   : > { %v1418_v56 = vpop.f32.mrf.mxu1 }
 0x11c   : > { %v1455_v57 = vpop.f32.mrf.mxu2  ;;  %v1419_v58 = vadd.f32 %v1418_v56, %v1389_v38 }
 0x11d   : > { %v1505_v59 = vpop.f32.mrf.mxu0 }
 0x11e   : > { %v1448_v60 = vadd.f32 %v1447_v43, %v1419_v58 }
 0x11f   : > { %v2830_v61 = vpop.f32.mrf.mxu3 }
 0x120   : > { %v1477_v40 = vadd.f32 %v1476_v49, %v1448_v60 }
 0x122   : > { %v1506_v43 = vadd.f32 %v1505_v59, %v1477_v40 }
 0x123   : > { %v1421_v62 = vpop.f32.mrf.mxu1 }
 0x124   : > { %v1457_v63 = vpop.f32.mrf.mxu2  ;;  %v1422_v0 = vadd.f32 %v1421_v62, %v1392_v44 }
 0x125   : > { %v1508_v2 = vpop.f32.mrf.mxu0 }
 0x126   : > { %v1451_v3 = vadd.f32 %v1450_v47, %v1422_v0 }
 0x127   : > { %v2832_v4 = vpop.f32.mrf.mxu3 }
 0x128   : > { %v1480_v50 = vadd.f32 %v1479_v55, %v1451_v3 }
 0x12a   : > { %v1509_v54 = vadd.f32 %v1508_v2, %v1480_v50 }
 0x12b   : > { %v1423_v5 = vpop.f32.mrf.mxu1 }
 0x12c   : > { %v1460_v6 = vpop.f32.mrf.mxu2  ;;  %v1424_v7 = vadd.f32 %v1423_v5, %v1394_v48 }
 0x12d   : > { %v2834_v8 = vpop.f32.mrf.mxu0 }
 0x12e   : > { %v1453_v9 = vadd.f32 %v1452_v51, %v1424_v7 }
 0x12f   : > { %v2836_v10 = vpop.f32.mrf.mxu3 }
 0x133   : > { %v1426_v11 = vpop.f32.mrf.mxu1 }
 0x134   : > { %v1462_v1 = vpop.f32.mrf.mxu2  ;;  %v1427_v12 = vadd.f32 %v1426_v11, %v1397_v28 }
 0x135   : > { %v2838_v13 = vpop.f32.mrf.mxu0 }
 0x136   : > { %v2840_v14 = vadd.f32 %v1455_v57, %v1427_v12 }
 0x137   : > { %v2842_v16 = vpop.f32.mrf.mxu3 }
 0x13b   : > { %v1428_v17 = vpop.f32.mrf.mxu1 }
 0x13c   : > { %v1561_v18 = vpop.f32.mrf.mxu2  ;;  %v1429_v19 = vadd.f32 %v1428_v17, %v1399_v36 }
 0x13d   : > { %v2844_v20 = vpop.f32.mrf.mxu0 }
 0x13e   : > { %v2846_v15 = vadd.f32 %v1457_v63, %v1429_v19  ;;  %v1482_v63 = vadd.f32 %v2830_v61, %v1453_v9  ;;  %v1485_v19 = vadd.f32 %v2832_v4, %v2840_v14 }
 0x13f   : > { %v2848_v21 = vpop.f32.mrf.mxu3 }
 0x140   : > { %v1511_v3 = vadd.f32 %v2834_v8, %v1482_v63 }
 0x143   : > { %v1431_v22 = vpop.f32.mrf.mxu1 }
 0x144   : > { %v1563_v23 = vpop.f32.mrf.mxu2  ;;  %v1432_v24 = vadd.f32 %v1431_v22, %v1402_v42 }
 0x145   : > { %v2850_v25 = vpop.f32.mrf.mxu0 }
 0x146   : > { %v2852_v26 = vadd.f32 %v1460_v6, %v1432_v24  ;;  %v1514_v24 = vadd.f32 %v2838_v13, %v1485_v19 }
 0x147   : > { %v1590_v27 = vpop.f32.mrf.mxu3 }
 0x14b   : > { %v1433_v28 = vpop.f32.mrf.mxu1 }
 0x14c   : > { %v1566_v29 = vpop.f32.mrf.mxu2  ;;  %v1434_v30 = vadd.f32 %v1433_v28, %v1404_v46 }
 0x14d   : > { %v2854_v31 = vpop.f32.mrf.mxu0 }
 0x14e   : > { %v2856_v33 = vadd.f32 %v1462_v1, %v1434_v30 }
 0x14f   : > { %v1592_v36 = vpop.f32.mrf.mxu3 }
 0x153   : > { %v1532_v35 = vpop.f32.mrf.mxu1 }
 0x154   : > { %v1533_v37 = vadd.f32 %v1532_v35, %v1504_v34  ;;  %v1568_v38 = vpop.f32.mrf.mxu2  ;;  %v1487_v35 = vadd.f32 %v2836_v10, %v2846_v15 }
 0x155   : > { %v1619_v39 = vpop.f32.mrf.mxu0 }
 0x156   : > { %v1562_v41 = vadd.f32 %v1561_v18, %v1533_v37  ;;  %v1516_v37 = vadd.f32 %v2844_v20, %v1487_v35 }
 0x157   : > { %v1595_v46 = vpop.f32.mrf.mxu3 }
 0x158   : > { %v1591_v42 = vadd.f32 %v1590_v27, %v1562_v41 }
 0x15a   : > { %v1620_v44 = vadd.f32 %v1619_v39, %v1591_v42 }
 0x15b   : > { %v1534_v47 = vpop.f32.mrf.mxu1 }
 0x15c   : > { %1639 = vst [vmem:[%s2859_s26] sm:$0xff] %v1620_v44  ;;  %v1535_v45 = vadd.f32 %v1534_v47, %v1506_v43  ;;  %v1571_v52 = vpop.f32.mrf.mxu2  ;;  %v1660_v57 = vmul.f32 %v1620_v44, %v1620_v44 }
 0x15d   : > { %v1621_v48 = vpop.f32.mrf.mxu0 }
 0x15e   : > { %v1564_v51 = vadd.f32 %v1563_v23, %v1535_v45 }
 0x15f   : > { %v1597_v6 = vpop.f32.mrf.mxu3 }
 0x160   : > { %v1593_v53 = vadd.f32 %v1592_v36, %v1564_v51 }
 0x162   : > { %v1622_v49 = vadd.f32 %v1621_v48, %v1593_v53 }
 0x163   : > { %v1537_v56 = vpop.f32.mrf.mxu1 }
 0x164   : > { %1640 = vst [vmem:[%s2859_s26 + $0x8] sm:$0xff] %v1622_v49  ;;  %v1647_v58 = vadd.f32 %v1622_v49, %v1620_v44  ;;  %v1661_v59 = vmul.f32 %v1622_v49, %v1622_v49  ;;  %v1538_v60 = vadd.f32 %v1537_v56, %v1509_v54  ;;  %v1573_v55 = vpop.f32.mrf.mxu2  ;;  %v1490_v44 = vadd.f32 %v2842_v16, %v2852_v26 }
 0x165   : > { %v1624_v62 = vpop.f32.mrf.mxu0  ;;  %v1492_v54 = vadd.f32 %v2848_v21, %v2856_v33 }
 0x166   : > { %v1668_v0 = vadd.f32 %v1661_v59, %v1660_v57  ;;  %v1567_v5 = vadd.f32 %v1566_v29, %v1538_v60 }
 0x167   : > { %v1600_v23 = vpop.f32.mrf.mxu3  ;;  %v1521_v57 = vadd.f32 %v2854_v31, %v1492_v54 }
 0x168   : > { %v1596_v7 = vadd.f32 %v1595_v46, %v1567_v5  ;;  %v1519_v46 = vadd.f32 %v2850_v25, %v1490_v44 }
 0x16a   : > { %v1625_v11 = vadd.f32 %v1624_v62, %v1596_v7 }
 0x16b   : > { %v1539_v2 = vpop.f32.mrf.mxu1 }
 0x16c   : > { %1641 = vst [vmem:[%s2859_s26 + $0x10] sm:$0xff] %v1625_v11  ;;  %v1648_v1 = vadd.f32 %v1647_v58, %v1625_v11  ;;  %v1662_v12 = vmul.f32 %v1625_v11, %v1625_v11  ;;  %v1540_v17 = vadd.f32 %v1539_v2, %v1511_v3  ;;  %v1576_v8 = vpop.f32.mrf.mxu2 }
 0x16d   : > { %v1626_v18 = vpop.f32.mrf.mxu0 }
 0x16e   : > { %v1669_v22 = vadd.f32 %v1668_v0, %v1662_v12  ;;  %v1569_v61 = vadd.f32 %v1568_v38, %v1540_v17 }
 0x16f   : > { %v1602_v13 = vpop.f32.mrf.mxu3 }
 0x170   : > { %v1598_v9 = vadd.f32 %v1597_v6, %v1569_v61 }
 0x172   : > { %v1627_v27 = vadd.f32 %v1626_v18, %v1598_v9 }
 0x173   : > { %v1542_v28 = vpop.f32.mrf.mxu1 }
 0x174   : > { %1642 = vst [vmem:[%s2859_s26 + $0x18] sm:$0xff] %v1627_v27  ;;  %v1649_v29 = vadd.f32 %v1648_v1, %v1627_v27  ;;  %v1663_v30 = vmul.f32 %v1627_v27, %v1627_v27  ;;  %v1543_v32 = vadd.f32 %v1542_v28, %v1514_v24  ;;  %v1578_v43 = vpop.f32.mrf.mxu2 }
 0x175   : > { %v1629_v34 = vpop.f32.mrf.mxu0 }
 0x176   : > { %v1670_v36 = vadd.f32 %v1669_v22, %v1663_v30  ;;  %v1572_v4 = vadd.f32 %v1571_v52, %v1543_v32 }
 0x177   : > { %v1605_v53 = vpop.f32.mrf.mxu3 }
 0x178   : > { %v1601_v14 = vadd.f32 %v1600_v23, %v1572_v4 }
 0x17a   : > { %v1630_v38 = vadd.f32 %v1629_v34, %v1601_v14 }
 0x17b   : > { %v1544_v39 = vpop.f32.mrf.mxu1 }
 0x17c   : > { %1643 = vst [vmem:[%s2859_s26 + $0x20] sm:$0xff] %v1630_v38  ;;  %v1650_v40 = vadd.f32 %v1649_v29, %v1630_v38  ;;  %v1664_v41 = vmul.f32 %v1630_v38, %v1630_v38  ;;  %v1545_v42 = vadd.f32 %v1544_v39, %v1516_v37  ;;  %v1634_v49 = vpop.f32.mrf.mxu2 }
 0x17d   : > { %v1631_v10 = vpop.f32.mrf.mxu0 }
 0x17e   : > { %v1671_v47 = vadd.f32 %v1670_v36, %v1664_v41  ;;  %v1574_v45 = vadd.f32 %v1573_v55, %v1545_v42 }
 0x17f   : > { %v1607_v63 = vpop.f32.mrf.mxu3 }
 0x180   : > { %v1603_v15 = vadd.f32 %v1602_v13, %v1574_v45 }
 0x182   : > { %v1632_v20 = vadd.f32 %v1631_v10, %v1603_v15 }
 0x183   : > { %v1547_v48 = vpop.f32.mrf.mxu1 }
 0x184   : > { %1644 = vst [vmem:[%s2859_s26 + $0x28] sm:$0xff] %v1632_v20  ;;  %v1651_v50 = vadd.f32 %v1650_v40, %v1632_v20  ;;  %v1665_v51 = vmul.f32 %v1632_v20, %v1632_v20  ;;  %v1548_v52 = vadd.f32 %v1547_v48, %v1519_v46  ;;  %v1636_v0 = vpop.f32.mrf.mxu2 }
 0x186   : > { %v1672_v16 = vadd.f32 %v1671_v47, %v1665_v51  ;;  %v1577_v26 = vadd.f32 %v1576_v8, %v1548_v52 }
 0x188   : > { %v1606_v56 = vadd.f32 %v1605_v53, %v1577_v26 }
 0x18a   : > { %v1635_v25 = vadd.f32 %v1634_v49, %v1606_v56 }
 0x18b   : > { %v1549_v58 = vpop.f32.mrf.mxu1 }
 0x18c   : > { %1645 = vst [vmem:[%s2859_s26 + $0x30] sm:$0xff] %v1635_v25  ;;  %v1652_v59 = vadd.f32 %v1651_v50, %v1635_v25  ;;  %v1666_v60 = vmul.f32 %v1635_v25, %v1635_v25  ;;  %v1550_v62 = vadd.f32 %v1549_v58, %v1521_v57 }
 0x18e   : > { %v1673_v21 = vadd.f32 %v1672_v16, %v1666_v60  ;;  %v1579_v33 = vadd.f32 %v1578_v43, %v1550_v62 }
 0x190   : > { %v1608_v31 = vadd.f32 %v1607_v63, %v1579_v33 }
 0x192   : > { %v1637_v5 = vadd.f32 %v1636_v0, %v1608_v31 }
 0x194   : > { %1646 = vst [vmem:[%s2859_s26 + $0x38] sm:$0xff] %v1637_v5  ;;  %v1653_v6 = vadd.f32 %v1652_v59, %v1637_v5  ;;  %v1667_v7 = vmul.f32 %v1637_v5, %v1637_v5 }
 0x195   : > { %2490 = shalt.err (!%p2487_p10)
}
 0x196   : > { %s2601_s26 = smov 128   ;;  %s2602_s24 = smov 8   ;;  %v1654_v55 = vrot.slane %v1653_v6, 4  ;;  %v1674_v3 = vadd.f32 %v1673_v21, %v1667_v7 }
 0x197   : > { %2335 = dma.vmem_to_hbm [thread:$0]  (%p2697_p7), %s1707_s11, 1024, %s1709_s12, %s1684_s13, %s2601_s26, %s2601_s26, %s2602_s24  }
 0x198   : > { %s1940_s27 = sshll.u32 %s2725_s25, 3  ;;  %s2235_s28 = sshll.u32 %s2649_s19, 3  ;;  %v1655_v11 = vadd.f32 %v1654_v55, %v1653_v6  ;;  %v1675_v2 = vrot.slane %v1674_v3, 4 }
 0x199   : > { %s1721_s10 = scalar_lea.hbm %s2958_s3, %s2235_s28  ;;  %s1688_s23 = sand.u32 1, %s2649_s19  }
 0x19a   : > { %v1676_v1 = vadd.f32 %v1675_v2, %v1674_v3  ;;  %v1656_v12 = vrot.slane %v1655_v11, 2  ;;  %s1735_s6 = scalar_lea.hbm %s2959_s4, %s2235_s28  ;;  %s245_s11 = scalar_lea.vmem [#allocation9], %s1940_s27 }
 0x19b   : > { %s1723_s12 = sshll.u32 %s245_s11, 4  ;;  %s1725_s13 = sshll.u32 %s1721_s10, 4  ;;  %s1724_s12 = int_to_ptr.vmem [resolvable:$true] %s1723_s12  ;;  %s1726_s13 = int_to_ptr.hbm [resolvable:$true] %s1725_s13 }
 0x19c   : > { %v1657_v17 = vadd.f32 %v1656_v12, %v1655_v11  ;;  %v1677_v18 = vrot.slane %v1676_v1, 2  ;;  %s1739_s25 = sshll.u32 %s1735_s6, 4  ;;  %s252_s21 = scalar_lea.vmem [#allocation11], %s1940_s27  ;;  %s2910_s25 = int_to_ptr.hbm [resolvable:$true] %s1739_s25 }
 0x19d   : > { %s1737_s26 = sshll.u32 %s252_s21, 4  ;;  %s1689_s19 = scalar_lea.sflag [#allocation10], %s1688_s23  ;;  %s2908_s26 = int_to_ptr.vmem [resolvable:$true] %s1737_s26 }
 0x19e   : > { %v1658_v19 = vrot.slane %v1657_v17, 1  ;;  %v1678_v22 = vadd.f32 %v1677_v18, %v1676_v1  ;;  %s2505_s24 = sshra.s32 %s1726_s13, 4  ;;  %s2511_s14 = scalar_lea.hbm %s2958_s3, 16  ;;  %s2506_s24 = int_to_ptr.hbm [resolvable:$true] %s2505_s24 }
 0x19f   : > { %s2507_s28 = scalar_lea.hbm %s2506_s24, 8  ;;  %p2512_p3 = scmp.lt.s32.totalorder %s2506_s24, %s2958_s3 }
 0x1a0   : > { %v1659_v61 = vadd.f32 %v1658_v19, %v1657_v17  ;;  %v1679_v9 = vrot.slane %v1678_v22, 1  ;;  %p2508_p12 = scmp.ne.s32.totalorder %s2506_s24, %s2507_s28  ;;  %p2513_p5 = scmp.lt.s32.totalorder %s2511_s14, %s2507_s28 }
 0x1a2   : > { %1681 = vst [vmem:[%s245_s11] sm:$0xff] %v1659_v61  ;;  %v1680_v23 = vadd.f32 %v1679_v9, %v1678_v22  ;;  %p2509_p13 = pnand %p2508_p12, %p2697_p7  ;;  %p2514_p1 = por %p2513_p5, %p2512_p3 }
 0x1a4   : > { %p2510_p0 = pneg %p2509_p13 }
 0x1a6   : > { %p2515_p4 = pnand %p2514_p1, %p2510_p0 }
 0x1a8   : > { %2518 = shalt.err (!%p2515_p4)
}
 0x1a9   : > { %2336 = dma.vmem_to_hbm [thread:$0]  (%p2697_p7), %s1724_s12, 128, %s1726_s13, %s1689_s19   ;;  %1682 = vst [vmem:[%s252_s21] sm:$0xff] %v1680_v23 }
 0x1aa   : > { %s2533_s23 = sshra.s32 %s2910_s25, 4  ;;  %s2539_s24 = scalar_lea.hbm %s2959_s4, 16  ;;  %s2534_s23 = int_to_ptr.hbm [resolvable:$true] %s2533_s23 }
 0x1ab   : > { %s2535_s5 = scalar_lea.hbm %s2534_s23, 8  ;;  %p2540_p2 = scmp.lt.s32.totalorder %s2534_s23, %s2959_s4 }
 0x1ac   : > { %p2536_p8 = scmp.ne.s32.totalorder %s2534_s23, %s2535_s5  ;;  %p2541_p10 = scmp.lt.s32.totalorder %s2539_s24, %s2535_s5 }
 0x1ae   : > { %p2537_p11 = pnand %p2536_p8, %p2697_p7  ;;  %p2542_p12 = por %p2541_p10, %p2540_p2 }
 0x1b0   : > { %p2538_p9 = pneg %p2537_p11 }
 0x1b2   : > { %p2543_p13 = pnand %p2542_p12, %p2538_p9 }
 0x1b4   : > { %2546 = shalt.err (!%p2543_p13)
}
 0x1b5   : > { %2337 = dma.vmem_to_hbm [thread:$0]  (%p2697_p7), %s2908_s26, 128, %s2910_s25, %s1689_s19  }
 0x1b6 PF: > { %s1751_s12 = sand.u32 1, %s2581_s15   ;;  %p2965_p0 = scmp.ge.s32.totalorder %s2593_s18, 2 }
 0x1b7   : > { %s1752_s13 = scalar_lea.sflag [#allocation5], %s1751_s12 }
 0x1b8   : > { %p2350_p3 = pnand %p2965_p0, %p2665_p6 }
 0x1ba   : > { %p2351_p5 = pneg %p2350_p3 }
 0x1bc   : > { %2572 = dma.done.wait (%p2351_p5), %s1752_s13, 1024  }
 0x1bd   : > { %2574 = vsyncadd (%p2351_p5), %s1752_s13, 4294966272  ;;  %s1761_s21 = sand.u32 1, %s1929_s20  }
 0x1be   : > { %s1762_s30 = scalar_lea.sflag [#allocation10], %s1761_s21 }
 0x1bf   : > { %2576 = dma.done.wait (%p2351_p5), %s1762_s30, 256  }
 0x1c0   : > { %2578 = vsyncadd (%p2351_p5), %s1762_s30, 4294967040  ;;  %p22_p7 = scmp.ge.s32.totalorder %s2683_s29, 4   ;;  %s2966_s15 = smov %s2585_s16 }
 0x1c1   : > { %s2967_s16 = smov %s2589_s17  ;;  %s2968_s17 = smov %s2693_s8 }
 0x1c2   : > { %s2969_s18 = smov %s2683_s29  ;;  %24 = sbr.rel (!%p22_p7) target bundleno = 8 (0x8), region = 180 }
 0x1c7   :  { %1778 = vsyncpa [#allocation4], 1 }
 0x1c8   :  { %1780 = vsyncpa [#allocation4 + $0x1], 1 }
 0x1c9   :  { %1781 = vsyncpa [#allocation7], 1 }
 0x1ca   :  { %1782 = vsyncpa [#allocation5], 1 }
 0x1cb   :  { %1784 = vsyncpa [#allocation5 + $0x1], 1 }
 0x1cc   :  { %1785 = vsyncpa [#allocation10], 1 }
 0x1cd   :  { %1787 = vsyncpa [#allocation10 + $0x1], 1 }

</bundles_post_ra>
